<compile_context>
chip_gen: v7x
topology: tpu7x:2x2x1
jax: 0.10.0
libtpu: 0.0.40
codegen_flags: <defaults>
</compile_context>

<pallas_src>
import functools

import jax
import jax.numpy as jnp
from jax.experimental import pallas as pl
from jax.experimental.pallas import tpu as pltpu


# ----------------------------------------------------------------------------
# Single fused kernel: h0 linear + GRU recurrence + (Linear+BN-folded+SELU)*.
# ----------------------------------------------------------------------------
def make_fused_kernel(n_fc, B, T, I, H):
    """Builds the fused PointSeqHazard forward kernel for fixed static shapes."""

    def kernel(ml_ref, len_ref, x_ref, avg_ref, avgw_ref, avgb_ref,
               wr_ref, wz_ref, wn_ref, ur_ref, uz_ref, un_ref,
               br_ref, bz_ref, bin_ref, bhn_ref, *rest):
        # rest = [fc_w0, fc_b0, fc_w1, fc_b1, ...] + [o_ref] + scratches
        fc_refs = rest[:2 * n_fc]
        o_ref = rest[2 * n_fc]
        h_scr, gr_scr, gz_scr, gn_scr = rest[2 * n_fc + 1:]

        max_len = ml_ref[0]                 # scalar in SMEM: max(lengths)
        lens = len_ref[...]                 # (B, 1) int32

        # --- h0 = avg_fc(avg) -------------------------------------------------
        h_scr[...] = (jnp.dot(avg_ref[...], avgw_ref[...],
                              preferred_element_type=jnp.float32)
                      + avgb_ref[...])

        # --- hoisted GRU input projection: one matmul per gate ----------------
        # x_ref is (B*T, I); row index = b*T + t (batch-major).
        x2 = x_ref[...]
        gr_scr[...] = (jnp.dot(x2, wr_ref[...],
                               preferred_element_type=jnp.float32) + br_ref[...])
        gz_scr[...] = (jnp.dot(x2, wz_ref[...],
                               preferred_element_type=jnp.float32) + bz_ref[...])
        gn_scr[...] = (jnp.dot(x2, wn_ref[...],
                               preferred_element_type=jnp.float32) + bin_ref[...])

        bhn = bhn_ref[...]                  # (1, H) hidden bias of the n gate

        # --- recurrence: unrolled, runtime-capped at max(lengths) -------------
        for t in range(T):
            @pl.when(t < max_len)
            def _step(t=t):
                h = h_scr[...]              # (B, H)
                # rows {b*T + t}: strided sublane load of the hoisted projections
                gr_t = gr_scr[pl.ds(t, B, stride=T), :]
                gz_t = gz_scr[pl.ds(t, B, stride=T), :]
                gn_t = gn_scr[pl.ds(t, B, stride=T), :]

                r = jax.nn.sigmoid(
                    gr_t + jnp.dot(h, ur_ref[...],
                                   preferred_element_type=jnp.float32))
                z = jax.nn.sigmoid(
                    gz_t + jnp.dot(h, uz_ref[...],
                                   preferred_element_type=jnp.float32))
                n = jnp.tanh(
                    gn_t + r * (jnp.dot(h, un_ref[...],
                                        preferred_element_type=jnp.float32) + bhn))
                h_new = (1.0 - z) * n + z * h
                # reproduce pack_padded_sequence: freeze h once t >= lengths[b]
                h_scr[...] = jnp.where(lens > t, h_new, h)

        # --- FC stack: (Dropout==id) -> Linear (BN folded) -> SELU ------------
        alpha = 1.6732632423543772
        scale = 1.0507009873554805
        x = h_scr[...]
        for i in range(n_fc):
            w = fc_refs[2 * i][...]
            b = fc_refs[2 * i + 1][...]
            y = jnp.dot(x, w, preferred_element_type=jnp.float32) + b
            x = scale * jnp.where(y > 0, y, alpha * (jnp.exp(y) - 1.0))

        o_ref[...] = x                       # (B, 1)

    return kernel


# ----------------------------------------------------------------------------
# Full PointSeqHazard forward (single pallas_call).
# ----------------------------------------------------------------------------
@jax.jit
def point_seq_hazard_forward(prep, inp, lengths, avg):
    B, T, I = inp.shape
    H = prep["avg_w"].shape[1]
    n_fc = len(prep["fc"])

    lengths = lengths.astype(jnp.int32)
    max_len = jnp.reshape(jnp.max(lengths), (1,))        # (1,) int32 -> SMEM
    len2d = lengths.reshape(B, 1)
    x2d = inp.reshape(B * T, I)                          # free collapse, no transpose

    flat_fc = [a for pair in prep["fc"] for a in pair]
    kernel = make_fused_kernel(n_fc=n_fc, B=B, T=T, I=I, H=H)

    n_vmem_inputs = 15 + 2 * n_fc
    in_specs = ([pl.BlockSpec(memory_space=pltpu.MemorySpace.SMEM)]
                + [pl.BlockSpec(memory_space=pltpu.MemorySpace.VMEM)
                   for _ in range(n_vmem_inputs)])

    out2d = pl.pallas_call(
        kernel,
        out_shape=jax.ShapeDtypeStruct((B, 1), jnp.float32),
        in_specs=in_specs,
        out_specs=pl.BlockSpec(memory_space=pltpu.MemorySpace.VMEM),
        scratch_shapes=[
            pltpu.VMEM((B, H), jnp.float32),          # hidden state h
            pltpu.VMEM((B * T, H), jnp.float32),      # hoisted gi_r
            pltpu.VMEM((B * T, H), jnp.float32),      # hoisted gi_z
            pltpu.VMEM((B * T, H), jnp.float32),      # hoisted gi_n
        ],
    )(max_len, len2d, x2d, avg,
      prep["avg_w"], prep["avg_b"],
      prep["wr"], prep["wz"], prep["wn"],
      prep["ur"], prep["uz"], prep["un"],
      prep["br"], prep["bz"], prep["bin"], prep["bhn"],
      *flat_fc)

    return out2d[:, 0]                                   # squeeze(-1) -> (B,)


# ----------------------------------------------------------------------------
# Parameters: raw (PyTorch layout) -> kernel layout (one-time transform).
# ----------------------------------------------------------------------------
def make_params(key, input_size, hidden, fc_dims):
    ks = iter(jax.random.split(key, 32))
    nrm = lambda shape, s=0.1: (s * jax.random.normal(next(ks), shape)
                                ).astype(jnp.float32)
    params = {
        "avg_fc_w": nrm((hidden, input_size - 1)),
        "avg_fc_b": nrm((hidden,)),
        "gru_w_ih": nrm((3 * hidden, input_size)),   # rows = [r; z; n]
        "gru_w_hh": nrm((3 * hidden, hidden)),
        "gru_b_ih": nrm((3 * hidden,)),
        "gru_b_hh": nrm((3 * hidden,)),
        "fc": [],
    }
    dims = [hidden] + fc_dims
    for i in range(len(dims) - 1):
        din, dout = dims[i], dims[i + 1]
        params["fc"].append((
            nrm((dout, din)),                        # Linear W
            nrm((dout,)),                            # Linear b
            1.0 + nrm((dout,), 0.05),                # BN gamma
            nrm((dout,), 0.05),                      # BN beta
            nrm((dout,), 0.05),                      # BN running_mean
            1.0 + jnp.abs(nrm((dout,), 0.05)),       # BN running_var
        ))
    return params


def prepare_params(params):
    """Pre-transpose weights, split GRU gates, fold eval-mode BN into Linear."""
    H = params["avg_fc_w"].shape[0]
    w_ih, w_hh = params["gru_w_ih"], params["gru_w_hh"]
    b_ih, b_hh = params["gru_b_ih"], params["gru_b_hh"]

    wr, wz, wn = (jnp.transpose(w_ih[i * H:(i + 1) * H]) for i in range(3))  # (I, H)
    ur, uz, un = (jnp.transpose(w_hh[i * H:(i + 1) * H]) for i in range(3))  # (H, H)
    bir, biz, bin_ = (b_ih[i * H:(i + 1) * H] for i in range(3))
    bhr, bhz, bhn = (b_hh[i * H:(i + 1) * H] for i in range(3))

    prep = {
        "avg_w": jnp.transpose(params["avg_fc_w"]),          # (I-1, H)
        "avg_b": params["avg_fc_b"].reshape(1, H),
        "wr": wr, "wz": wz, "wn": wn,
        "ur": ur, "uz": uz, "un": un,
        "br": (bir + bhr).reshape(1, H),                      # combined r bias
        "bz": (biz + bhz).reshape(1, H),                      # combined z bias
        "bin": bin_.reshape(1, H),                            # input-side n bias
        "bhn": bhn.reshape(1, H),                             # hidden-side n bias
        "fc": [],
    }
    eps = 1e-5
    for (lw, lb, g, be, mu, var) in params["fc"]:
        s = g * jax.lax.rsqrt(var + eps)                      # (dout,)
        w_f = jnp.transpose(lw) * s[None, :]                  # (din, dout), BN folded
        b_f = ((lb - mu) * s + be).reshape(1, -1)             # (1, dout)
        prep["fc"].append((w_f, b_f))
    return prep


if __name__ == "__main__":
    # args: task='point_seq_hazard', input_size=6, hidden_size_point_seq=32,
    #       fc_point_seq=[16, 1]
    B, T, I, H = 8, 8, 6, 32
    fc_dims = [16, 1]

    key = jax.random.PRNGKey(0)
    k_p, k_x, k_a, k_l = jax.random.split(key, 4)

    raw_params = make_params(k_p, I, H, fc_dims)
    prep = prepare_params(raw_params)

    inp = jax.random.normal(k_x, (B, T, I), dtype=jnp.float32)      # (B, T, I)
    avg = jax.random.normal(k_a, (B, I - 1), dtype=jnp.float32)     # (B, I-1)
    lengths = jax.random.randint(k_l, (B,), 1, T + 1)               # 1..T

    out = point_seq_hazard_forward(prep, inp, lengths, avg)
    out = jax.block_until_ready(out)
    assert out.shape == (B,), out.shape
    assert bool(jnp.all(jnp.isfinite(out)))
    print("KERNEL_OK")
</pallas_src>

<mosaic_0001>
module attributes {stable_mosaic.version = 11 : i64} {
  func.func @kernel(%arg0: memref<1xi32, #tpu.memory_space<smem>>, %arg1: memref<8x1xi32, #tpu.memory_space<vmem>>, %arg2: memref<64x6xf32, #tpu.memory_space<vmem>>, %arg3: memref<8x5xf32, #tpu.memory_space<vmem>>, %arg4: memref<5x32xf32, #tpu.memory_space<vmem>>, %arg5: memref<1x32xf32, #tpu.memory_space<vmem>>, %arg6: memref<6x32xf32, #tpu.memory_space<vmem>>, %arg7: memref<6x32xf32, #tpu.memory_space<vmem>>, %arg8: memref<6x32xf32, #tpu.memory_space<vmem>>, %arg9: memref<32x32xf32, #tpu.memory_space<vmem>>, %arg10: memref<32x32xf32, #tpu.memory_space<vmem>>, %arg11: memref<32x32xf32, #tpu.memory_space<vmem>>, %arg12: memref<1x32xf32, #tpu.memory_space<vmem>>, %arg13: memref<1x32xf32, #tpu.memory_space<vmem>>, %arg14: memref<1x32xf32, #tpu.memory_space<vmem>>, %arg15: memref<1x32xf32, #tpu.memory_space<vmem>>, %arg16: memref<32x16xf32, #tpu.memory_space<vmem>>, %arg17: memref<1x16xf32, #tpu.memory_space<vmem>>, %arg18: memref<16x1xf32, #tpu.memory_space<vmem>>, %arg19: memref<1x1xf32, #tpu.memory_space<vmem>>, %arg20: memref<8x1xf32, #tpu.memory_space<vmem>>, %arg21: memref<8x32xf32, #tpu.memory_space<vmem>>, %arg22: memref<64x32xf32, #tpu.memory_space<vmem>>, %arg23: memref<64x32xf32, #tpu.memory_space<vmem>>, %arg24: memref<64x32xf32, #tpu.memory_space<vmem>>) attributes {dimension_semantics = [], scalar_prefetch = 0 : i64, scratch_operands = 4 : i64, tpu.core_type = #tpu.core_type<tc>} {
    %c0 = arith.constant 0 : index
    %0 = memref.load %arg0[%c0] : memref<1xi32, #tpu.memory_space<smem>>
    %c0_0 = arith.constant 0 : index
    %c0_1 = arith.constant 0 : index
    %1 = vector.load %arg1[%c0_0, %c0_1] : memref<8x1xi32, #tpu.memory_space<vmem>>, vector<8x1xi32>
    %c0_2 = arith.constant 0 : index
    %c0_3 = arith.constant 0 : index
    %2 = vector.load %arg3[%c0_2, %c0_3] : memref<8x5xf32, #tpu.memory_space<vmem>>, vector<8x5xf32>
    %c0_4 = arith.constant 0 : index
    %c0_5 = arith.constant 0 : index
    %3 = vector.load %arg4[%c0_4, %c0_5] : memref<5x32xf32, #tpu.memory_space<vmem>>, vector<5x32xf32>
    %cst = arith.constant dense<0.000000e+00> : vector<8x32xf32>
    %4 = tpu.matmul %2, %3, %cst {dimension_numbers = #tpu.dot_dimension_numbers<[1], [0], [0], [1], [0, 0, 1, 1], [], []>} : vector<8x5xf32>, vector<5x32xf32>, vector<8x32xf32> -> vector<8x32xf32>
    %c0_6 = arith.constant 0 : index
    %c0_7 = arith.constant 0 : index
    %5 = vector.load %arg5[%c0_6, %c0_7] : memref<1x32xf32, #tpu.memory_space<vmem>>, vector<1x32xf32>
    %6 = vector.broadcast %5 : vector<1x32xf32> to vector<8x32xf32>
    %7 = arith.addf %4, %6 : vector<8x32xf32>
    %c0_8 = arith.constant 0 : index
    %c0_9 = arith.constant 0 : index
    %8 = vector.load %arg21[%c0_8, %c0_9] : memref<8x32xf32, #tpu.memory_space<vmem>>, vector<8x32xf32>
    tpu.vector_store %arg21[%c0_8, %c0_9], %7 {strides = array<i32>} : memref<8x32xf32, #tpu.memory_space<vmem>>, vector<8x32xf32>,
    %c0_10 = arith.constant 0 : index
    %c0_11 = arith.constant 0 : index
    %9 = vector.load %arg2[%c0_10, %c0_11] : memref<64x6xf32, #tpu.memory_space<vmem>>, vector<64x6xf32>
    %c0_12 = arith.constant 0 : index
    %c0_13 = arith.constant 0 : index
    %10 = vector.load %arg6[%c0_12, %c0_13] : memref<6x32xf32, #tpu.memory_space<vmem>>, vector<6x32xf32>
    %cst_14 = arith.constant dense<0.000000e+00> : vector<64x32xf32>
    %11 = tpu.matmul %9, %10, %cst_14 {dimension_numbers = #tpu.dot_dimension_numbers<[1], [0], [0], [1], [0, 0, 1, 1], [], []>} : vector<64x6xf32>, vector<6x32xf32>, vector<64x32xf32> -> vector<64x32xf32>
    %c0_15 = arith.constant 0 : index
    %c0_16 = arith.constant 0 : index
    %12 = vector.load %arg12[%c0_15, %c0_16] : memref<1x32xf32, #tpu.memory_space<vmem>>, vector<1x32xf32>
    %13 = vector.broadcast %12 : vector<1x32xf32> to vector<64x32xf32>
    %14 = arith.addf %11, %13 : vector<64x32xf32>
    %c0_17 = arith.constant 0 : index
    %c0_18 = arith.constant 0 : index
    %15 = vector.load %arg22[%c0_17, %c0_18] : memref<64x32xf32, #tpu.memory_space<vmem>>, vector<64x32xf32>
    tpu.vector_store %arg22[%c0_17, %c0_18], %14 {strides = array<i32>} : memref<64x32xf32, #tpu.memory_space<vmem>>, vector<64x32xf32>,
    %c0_19 = arith.constant 0 : index
    %c0_20 = arith.constant 0 : index
    %16 = vector.load %arg7[%c0_19, %c0_20] : memref<6x32xf32, #tpu.memory_space<vmem>>, vector<6x32xf32>
    %cst_21 = arith.constant dense<0.000000e+00> : vector<64x32xf32>
    %17 = tpu.matmul %9, %16, %cst_21 {dimension_numbers = #tpu.dot_dimension_numbers<[1], [0], [0], [1], [0, 0, 1, 1], [], []>} : vector<64x6xf32>, vector<6x32xf32>, vector<64x32xf32> -> vector<64x32xf32>
    %c0_22 = arith.constant 0 : index
    %c0_23 = arith.constant 0 : index
    %18 = vector.load %arg13[%c0_22, %c0_23] : memref<1x32xf32, #tpu.memory_space<vmem>>, vector<1x32xf32>
    %19 = vector.broadcast %18 : vector<1x32xf32> to vector<64x32xf32>
    %20 = arith.addf %17, %19 : vector<64x32xf32>
    %c0_24 = arith.constant 0 : index
    %c0_25 = arith.constant 0 : index
    %21 = vector.load %arg23[%c0_24, %c0_25] : memref<64x32xf32, #tpu.memory_space<vmem>>, vector<64x32xf32>
    tpu.vector_store %arg23[%c0_24, %c0_25], %20 {strides = array<i32>} : memref<64x32xf32, #tpu.memory_space<vmem>>, vector<64x32xf32>,
    %c0_26 = arith.constant 0 : index
    %c0_27 = arith.constant 0 : index
    %22 = vector.load %arg8[%c0_26, %c0_27] : memref<6x32xf32, #tpu.memory_space<vmem>>, vector<6x32xf32>
    %cst_28 = arith.constant dense<0.000000e+00> : vector<64x32xf32>
    %23 = tpu.matmul %9, %22, %cst_28 {dimension_numbers = #tpu.dot_dimension_numbers<[1], [0], [0], [1], [0, 0, 1, 1], [], []>} : vector<64x6xf32>, vector<6x32xf32>, vector<64x32xf32> -> vector<64x32xf32>
    %c0_29 = arith.constant 0 : index
    %c0_30 = arith.constant 0 : index
    %24 = vector.load %arg14[%c0_29, %c0_30] : memref<1x32xf32, #tpu.memory_space<vmem>>, vector<1x32xf32>
    %25 = vector.broadcast %24 : vector<1x32xf32> to vector<64x32xf32>
    %26 = arith.addf %23, %25 : vector<64x32xf32>
    %c0_31 = arith.constant 0 : index
    %c0_32 = arith.constant 0 : index
    %27 = vector.load %arg24[%c0_31, %c0_32] : memref<64x32xf32, #tpu.memory_space<vmem>>, vector<64x32xf32>
    tpu.vector_store %arg24[%c0_31, %c0_32], %26 {strides = array<i32>} : memref<64x32xf32, #tpu.memory_space<vmem>>, vector<64x32xf32>,
    %c0_33 = arith.constant 0 : index
    %c0_34 = arith.constant 0 : index
    %28 = vector.load %arg15[%c0_33, %c0_34] : memref<1x32xf32, #tpu.memory_space<vmem>>, vector<1x32xf32>
    %c0_i32 = arith.constant 0 : i32
    %29 = arith.cmpi sgt, %0, %c0_i32 : i32
    %30 = arith.extui %29 : i1 to i32
    %c0_i32_35 = arith.constant 0 : i32
    %31 = arith.cmpi ne, %30, %c0_i32_35 : i32
    scf.if %31 {
      %c0_65 = arith.constant 0 : index
      %c0_66 = arith.constant 0 : index
      %85 = vector.load %arg21[%c0_65, %c0_66] : memref<8x32xf32, #tpu.memory_space<vmem>>, vector<8x32xf32>
      %c0_67 = arith.constant 0 : index
      %c0_68 = arith.constant 0 : index
      %86 = tpu.strided_load %arg22[%c0_67, %c0_68] {strides = array<i32: 8, 1>} : memref<64x32xf32, #tpu.memory_space<vmem>>, vector<8x32xf32>
      %c0_69 = arith.constant 0 : index
      %c0_70 = arith.constant 0 : index
      %87 = tpu.strided_load %arg23[%c0_69, %c0_70] {strides = array<i32: 8, 1>} : memref<64x32xf32, #tpu.memory_space<vmem>>, vector<8x32xf32>
      %c0_71 = arith.constant 0 : index
      %c0_72 = arith.constant 0 : index
      %88 = tpu.strided_load %arg24[%c0_71, %c0_72] {strides = array<i32: 8, 1>} : memref<64x32xf32, #tpu.memory_space<vmem>>, vector<8x32xf32>
      %c0_73 = arith.constant 0 : index
      %c0_74 = arith.constant 0 : index
      %89 = vector.load %arg9[%c0_73, %c0_74] : memref<32x32xf32, #tpu.memory_space<vmem>>, vector<32x32xf32>
      %cst_75 = arith.constant dense<0.000000e+00> : vector<8x32xf32>
      %90 = tpu.matmul %85, %89, %cst_75 {dimension_numbers = #tpu.dot_dimension_numbers<[1], [0], [0], [1], [0, 0, 1, 1], [], []>} : vector<8x32xf32>, vector<32x32xf32>, vector<8x32xf32> -> vector<8x32xf32>
      %91 = arith.addf %86, %90 : vector<8x32xf32>
      %92 = arith.negf %91 : vector<8x32xf32>
      %93 = math.exp %92 : vector<8x32xf32>
      %cst_76 = arith.constant 1.000000e+00 : f32
      %94 = vector.broadcast %cst_76 : f32 to vector<8x32xf32>
      %95 = arith.addf %94, %93 : vector<8x32xf32>
      %96 = arith.divf %94, %95 : vector<8x32xf32>
      %c0_77 = arith.constant 0 : index
      %c0_78 = arith.constant 0 : index
      %97 = vector.load %arg10[%c0_77, %c0_78] : memref<32x32xf32, #tpu.memory_space<vmem>>, vector<32x32xf32>
      %cst_79 = arith.constant dense<0.000000e+00> : vector<8x32xf32>
      %98 = tpu.matmul %85, %97, %cst_79 {dimension_numbers = #tpu.dot_dimension_numbers<[1], [0], [0], [1], [0, 0, 1, 1], [], []>} : vector<8x32xf32>, vector<32x32xf32>, vector<8x32xf32> -> vector<8x32xf32>
      %99 = arith.addf %87, %98 : vector<8x32xf32>
      %100 = arith.negf %99 : vector<8x32xf32>
      %101 = math.exp %100 : vector<8x32xf32>
      %cst_80 = arith.constant 1.000000e+00 : f32
      %102 = vector.broadcast %cst_80 : f32 to vector<8x32xf32>
      %103 = arith.addf %102, %101 : vector<8x32xf32>
      %104 = arith.divf %102, %103 : vector<8x32xf32>
      %c0_81 = arith.constant 0 : index
      %c0_82 = arith.constant 0 : index
      %105 = vector.load %arg11[%c0_81, %c0_82] : memref<32x32xf32, #tpu.memory_space<vmem>>, vector<32x32xf32>
      %cst_83 = arith.constant dense<0.000000e+00> : vector<8x32xf32>
      %106 = tpu.matmul %85, %105, %cst_83 {dimension_numbers = #tpu.dot_dimension_numbers<[1], [0], [0], [1], [0, 0, 1, 1], [], []>} : vector<8x32xf32>, vector<32x32xf32>, vector<8x32xf32> -> vector<8x32xf32>
      %107 = vector.broadcast %28 : vector<1x32xf32> to vector<8x32xf32>
      %108 = arith.addf %106, %107 : vector<8x32xf32>
      %109 = arith.mulf %96, %108 : vector<8x32xf32>
      %110 = arith.addf %88, %109 : vector<8x32xf32>
      %111 = math.tanh %110 : vector<8x32xf32>
      %cst_84 = arith.constant 1.000000e+00 : f32
      %112 = vector.broadcast %cst_84 : f32 to vector<8x32xf32>
      %113 = arith.subf %112, %104 : vector<8x32xf32>
      %114 = arith.mulf %113, %111 : vector<8x32xf32>
      %115 = arith.mulf %104, %85 : vector<8x32xf32>
      %116 = arith.addf %114, %115 : vector<8x32xf32>
      %c0_i32_85 = arith.constant 0 : i32
      %117 = vector.broadcast %c0_i32_85 : i32 to vector<8x1xi32>
      %118 = arith.cmpi sgt, %1, %117 : vector<8x1xi32>
      %119 = vector.shape_cast %118 : vector<8x1xi1> to vector<8x1xi1>
      %120 = vector.broadcast %119 : vector<8x1xi1> to vector<8x32xi1>
      %121 = arith.select %120, %116, %85 : vector<8x32xi1>, vector<8x32xf32>
      %c0_86 = arith.constant 0 : index
      %c0_87 = arith.constant 0 : index
      %122 = vector.load %arg21[%c0_86, %c0_87] : memref<8x32xf32, #tpu.memory_space<vmem>>, vector<8x32xf32>
      tpu.vector_store %arg21[%c0_86, %c0_87], %121 {strides = array<i32>} : memref<8x32xf32, #tpu.memory_space<vmem>>, vector<8x32xf32>,
    } else {
    }
    %c1_i32 = arith.constant 1 : i32
    %32 = arith.cmpi sgt, %0, %c1_i32 : i32
    %33 = arith.extui %32 : i1 to i32
    %c0_i32_36 = arith.constant 0 : i32
    %34 = arith.cmpi ne, %33, %c0_i32_36 : i32
    scf.if %34 {
      %c0_65 = arith.constant 0 : index
      %c0_66 = arith.constant 0 : index
      %85 = vector.load %arg21[%c0_65, %c0_66] : memref<8x32xf32, #tpu.memory_space<vmem>>, vector<8x32xf32>
      %c1 = arith.constant 1 : index
      %c0_67 = arith.constant 0 : index
      %86 = tpu.strided_load %arg22[%c1, %c0_67] {strides = array<i32: 8, 1>} : memref<64x32xf32, #tpu.memory_space<vmem>>, vector<8x32xf32>
      %c1_68 = arith.constant 1 : index
      %c0_69 = arith.constant 0 : index
      %87 = tpu.strided_load %arg23[%c1_68, %c0_69] {strides = array<i32: 8, 1>} : memref<64x32xf32, #tpu.memory_space<vmem>>, vector<8x32xf32>
      %c1_70 = arith.constant 1 : index
      %c0_71 = arith.constant 0 : index
      %88 = tpu.strided_load %arg24[%c1_70, %c0_71] {strides = array<i32: 8, 1>} : memref<64x32xf32, #tpu.memory_space<vmem>>, vector<8x32xf32>
      %c0_72 = arith.constant 0 : index
      %c0_73 = arith.constant 0 : index
      %89 = vector.load %arg9[%c0_72, %c0_73] : memref<32x32xf32, #tpu.memory_space<vmem>>, vector<32x32xf32>
      %cst_74 = arith.constant dense<0.000000e+00> : vector<8x32xf32>
      %90 = tpu.matmul %85, %89, %cst_74 {dimension_numbers = #tpu.dot_dimension_numbers<[1], [0], [0], [1], [0, 0, 1, 1], [], []>} : vector<8x32xf32>, vector<32x32xf32>, vector<8x32xf32> -> vector<8x32xf32>
      %91 = arith.addf %86, %90 : vector<8x32xf32>
      %92 = arith.negf %91 : vector<8x32xf32>
      %93 = math.exp %92 : vector<8x32xf32>
      %cst_75 = arith.constant 1.000000e+00 : f32
      %94 = vector.broadcast %cst_75 : f32 to vector<8x32xf32>
      %95 = arith.addf %94, %93 : vector<8x32xf32>
      %96 = arith.divf %94, %95 : vector<8x32xf32>
      %c0_76 = arith.constant 0 : index
      %c0_77 = arith.constant 0 : index
      %97 = vector.load %arg10[%c0_76, %c0_77] : memref<32x32xf32, #tpu.memory_space<vmem>>, vector<32x32xf32>
      %cst_78 = arith.constant dense<0.000000e+00> : vector<8x32xf32>
      %98 = tpu.matmul %85, %97, %cst_78 {dimension_numbers = #tpu.dot_dimension_numbers<[1], [0], [0], [1], [0, 0, 1, 1], [], []>} : vector<8x32xf32>, vector<32x32xf32>, vector<8x32xf32> -> vector<8x32xf32>
      %99 = arith.addf %87, %98 : vector<8x32xf32>
      %100 = arith.negf %99 : vector<8x32xf32>
      %101 = math.exp %100 : vector<8x32xf32>
      %cst_79 = arith.constant 1.000000e+00 : f32
      %102 = vector.broadcast %cst_79 : f32 to vector<8x32xf32>
      %103 = arith.addf %102, %101 : vector<8x32xf32>
      %104 = arith.divf %102, %103 : vector<8x32xf32>
      %c0_80 = arith.constant 0 : index
      %c0_81 = arith.constant 0 : index
      %105 = vector.load %arg11[%c0_80, %c0_81] : memref<32x32xf32, #tpu.memory_space<vmem>>, vector<32x32xf32>
      %cst_82 = arith.constant dense<0.000000e+00> : vector<8x32xf32>
      %106 = tpu.matmul %85, %105, %cst_82 {dimension_numbers = #tpu.dot_dimension_numbers<[1], [0], [0], [1], [0, 0, 1, 1], [], []>} : vector<8x32xf32>, vector<32x32xf32>, vector<8x32xf32> -> vector<8x32xf32>
      %107 = vector.broadcast %28 : vector<1x32xf32> to vector<8x32xf32>
      %108 = arith.addf %106, %107 : vector<8x32xf32>
      %109 = arith.mulf %96, %108 : vector<8x32xf32>
      %110 = arith.addf %88, %109 : vector<8x32xf32>
      %111 = math.tanh %110 : vector<8x32xf32>
      %cst_83 = arith.constant 1.000000e+00 : f32
      %112 = vector.broadcast %cst_83 : f32 to vector<8x32xf32>
      %113 = arith.subf %112, %104 : vector<8x32xf32>
      %114 = arith.mulf %113, %111 : vector<8x32xf32>
      %115 = arith.mulf %104, %85 : vector<8x32xf32>
      %116 = arith.addf %114, %115 : vector<8x32xf32>
      %c1_i32_84 = arith.constant 1 : i32
      %117 = vector.broadcast %c1_i32_84 : i32 to vector<8x1xi32>
      %118 = arith.cmpi sgt, %1, %117 : vector<8x1xi32>
      %119 = vector.shape_cast %118 : vector<8x1xi1> to vector<8x1xi1>
      %120 = vector.broadcast %119 : vector<8x1xi1> to vector<8x32xi1>
      %121 = arith.select %120, %116, %85 : vector<8x32xi1>, vector<8x32xf32>
      %c0_85 = arith.constant 0 : index
      %c0_86 = arith.constant 0 : index
      %122 = vector.load %arg21[%c0_85, %c0_86] : memref<8x32xf32, #tpu.memory_space<vmem>>, vector<8x32xf32>
      tpu.vector_store %arg21[%c0_85, %c0_86], %121 {strides = array<i32>} : memref<8x32xf32, #tpu.memory_space<vmem>>, vector<8x32xf32>,
    } else {
    }
    %c2_i32 = arith.constant 2 : i32
    %35 = arith.cmpi sgt, %0, %c2_i32 : i32
    %36 = arith.extui %35 : i1 to i32
    %c0_i32_37 = arith.constant 0 : i32
    %37 = arith.cmpi ne, %36, %c0_i32_37 : i32
    scf.if %37 {
      %c0_65 = arith.constant 0 : index
      %c0_66 = arith.constant 0 : index
      %85 = vector.load %arg21[%c0_65, %c0_66] : memref<8x32xf32, #tpu.memory_space<vmem>>, vector<8x32xf32>
      %c2 = arith.constant 2 : index
      %c0_67 = arith.constant 0 : index
      %86 = tpu.strided_load %arg22[%c2, %c0_67] {strides = array<i32: 8, 1>} : memref<64x32xf32, #tpu.memory_space<vmem>>, vector<8x32xf32>
      %c2_68 = arith.constant 2 : index
      %c0_69 = arith.constant 0 : index
      %87 = tpu.strided_load %arg23[%c2_68, %c0_69] {strides = array<i32: 8, 1>} : memref<64x32xf32, #tpu.memory_space<vmem>>, vector<8x32xf32>
      %c2_70 = arith.constant 2 : index
      %c0_71 = arith.constant 0 : index
      %88 = tpu.strided_load %arg24[%c2_70, %c0_71] {strides = array<i32: 8, 1>} : memref<64x32xf32, #tpu.memory_space<vmem>>, vector<8x32xf32>
      %c0_72 = arith.constant 0 : index
      %c0_73 = arith.constant 0 : index
      %89 = vector.load %arg9[%c0_72, %c0_73] : memref<32x32xf32, #tpu.memory_space<vmem>>, vector<32x32xf32>
      %cst_74 = arith.constant dense<0.000000e+00> : vector<8x32xf32>
      %90 = tpu.matmul %85, %89, %cst_74 {dimension_numbers = #tpu.dot_dimension_numbers<[1], [0], [0], [1], [0, 0, 1, 1], [], []>} : vector<8x32xf32>, vector<32x32xf32>, vector<8x32xf32> -> vector<8x32xf32>
      %91 = arith.addf %86, %90 : vector<8x32xf32>
      %92 = arith.negf %91 : vector<8x32xf32>
      %93 = math.exp %92 : vector<8x32xf32>
      %cst_75 = arith.constant 1.000000e+00 : f32
      %94 = vector.broadcast %cst_75 : f32 to vector<8x32xf32>
      %95 = arith.addf %94, %93 : vector<8x32xf32>
      %96 = arith.divf %94, %95 : vector<8x32xf32>
      %c0_76 = arith.constant 0 : index
      %c0_77 = arith.constant 0 : index
      %97 = vector.load %arg10[%c0_76, %c0_77] : memref<32x32xf32, #tpu.memory_space<vmem>>, vector<32x32xf32>
      %cst_78 = arith.constant dense<0.000000e+00> : vector<8x32xf32>
      %98 = tpu.matmul %85, %97, %cst_78 {dimension_numbers = #tpu.dot_dimension_numbers<[1], [0], [0], [1], [0, 0, 1, 1], [], []>} : vector<8x32xf32>, vector<32x32xf32>, vector<8x32xf32> -> vector<8x32xf32>
      %99 = arith.addf %87, %98 : vector<8x32xf32>
      %100 = arith.negf %99 : vector<8x32xf32>
      %101 = math.exp %100 : vector<8x32xf32>
      %cst_79 = arith.constant 1.000000e+00 : f32
      %102 = vector.broadcast %cst_79 : f32 to vector<8x32xf32>
      %103 = arith.addf %102, %101 : vector<8x32xf32>
      %104 = arith.divf %102, %103 : vector<8x32xf32>
      %c0_80 = arith.constant 0 : index
      %c0_81 = arith.constant 0 : index
      %105 = vector.load %arg11[%c0_80, %c0_81] : memref<32x32xf32, #tpu.memory_space<vmem>>, vector<32x32xf32>
      %cst_82 = arith.constant dense<0.000000e+00> : vector<8x32xf32>
      %106 = tpu.matmul %85, %105, %cst_82 {dimension_numbers = #tpu.dot_dimension_numbers<[1], [0], [0], [1], [0, 0, 1, 1], [], []>} : vector<8x32xf32>, vector<32x32xf32>, vector<8x32xf32> -> vector<8x32xf32>
      %107 = vector.broadcast %28 : vector<1x32xf32> to vector<8x32xf32>
      %108 = arith.addf %106, %107 : vector<8x32xf32>
      %109 = arith.mulf %96, %108 : vector<8x32xf32>
      %110 = arith.addf %88, %109 : vector<8x32xf32>
      %111 = math.tanh %110 : vector<8x32xf32>
      %cst_83 = arith.constant 1.000000e+00 : f32
      %112 = vector.broadcast %cst_83 : f32 to vector<8x32xf32>
      %113 = arith.subf %112, %104 : vector<8x32xf32>
      %114 = arith.mulf %113, %111 : vector<8x32xf32>
      %115 = arith.mulf %104, %85 : vector<8x32xf32>
      %116 = arith.addf %114, %115 : vector<8x32xf32>
      %c2_i32_84 = arith.constant 2 : i32
      %117 = vector.broadcast %c2_i32_84 : i32 to vector<8x1xi32>
      %118 = arith.cmpi sgt, %1, %117 : vector<8x1xi32>
      %119 = vector.shape_cast %118 : vector<8x1xi1> to vector<8x1xi1>
      %120 = vector.broadcast %119 : vector<8x1xi1> to vector<8x32xi1>
      %121 = arith.select %120, %116, %85 : vector<8x32xi1>, vector<8x32xf32>
      %c0_85 = arith.constant 0 : index
      %c0_86 = arith.constant 0 : index
      %122 = vector.load %arg21[%c0_85, %c0_86] : memref<8x32xf32, #tpu.memory_space<vmem>>, vector<8x32xf32>
      tpu.vector_store %arg21[%c0_85, %c0_86], %121 {strides = array<i32>} : memref<8x32xf32, #tpu.memory_space<vmem>>, vector<8x32xf32>,
    } else {
    }
    %c3_i32 = arith.constant 3 : i32
    %38 = arith.cmpi sgt, %0, %c3_i32 : i32
    %39 = arith.extui %38 : i1 to i32
    %c0_i32_38 = arith.constant 0 : i32
    %40 = arith.cmpi ne, %39, %c0_i32_38 : i32
    scf.if %40 {
      %c0_65 = arith.constant 0 : index
      %c0_66 = arith.constant 0 : index
      %85 = vector.load %arg21[%c0_65, %c0_66] : memref<8x32xf32, #tpu.memory_space<vmem>>, vector<8x32xf32>
      %c3 = arith.constant 3 : index
      %c0_67 = arith.constant 0 : index
      %86 = tpu.strided_load %arg22[%c3, %c0_67] {strides = array<i32: 8, 1>} : memref<64x32xf32, #tpu.memory_space<vmem>>, vector<8x32xf32>
      %c3_68 = arith.constant 3 : index
      %c0_69 = arith.constant 0 : index
      %87 = tpu.strided_load %arg23[%c3_68, %c0_69] {strides = array<i32: 8, 1>} : memref<64x32xf32, #tpu.memory_space<vmem>>, vector<8x32xf32>
      %c3_70 = arith.constant 3 : index
      %c0_71 = arith.constant 0 : index
      %88 = tpu.strided_load %arg24[%c3_70, %c0_71] {strides = array<i32: 8, 1>} : memref<64x32xf32, #tpu.memory_space<vmem>>, vector<8x32xf32>
      %c0_72 = arith.constant 0 : index
      %c0_73 = arith.constant 0 : index
      %89 = vector.load %arg9[%c0_72, %c0_73] : memref<32x32xf32, #tpu.memory_space<vmem>>, vector<32x32xf32>
      %cst_74 = arith.constant dense<0.000000e+00> : vector<8x32xf32>
      %90 = tpu.matmul %85, %89, %cst_74 {dimension_numbers = #tpu.dot_dimension_numbers<[1], [0], [0], [1], [0, 0, 1, 1], [], []>} : vector<8x32xf32>, vector<32x32xf32>, vector<8x32xf32> -> vector<8x32xf32>
      %91 = arith.addf %86, %90 : vector<8x32xf32>
      %92 = arith.negf %91 : vector<8x32xf32>
      %93 = math.exp %92 : vector<8x32xf32>
      %cst_75 = arith.constant 1.000000e+00 : f32
      %94 = vector.broadcast %cst_75 : f32 to vector<8x32xf32>
      %95 = arith.addf %94, %93 : vector<8x32xf32>
      %96 = arith.divf %94, %95 : vector<8x32xf32>
      %c0_76 = arith.constant 0 : index
      %c0_77 = arith.constant 0 : index
      %97 = vector.load %arg10[%c0_76, %c0_77] : memref<32x32xf32, #tpu.memory_space<vmem>>, vector<32x32xf32>
      %cst_78 = arith.constant dense<0.000000e+00> : vector<8x32xf32>
      %98 = tpu.matmul %85, %97, %cst_78 {dimension_numbers = #tpu.dot_dimension_numbers<[1], [0], [0], [1], [0, 0, 1, 1], [], []>} : vector<8x32xf32>, vector<32x32xf32>, vector<8x32xf32> -> vector<8x32xf32>
      %99 = arith.addf %87, %98 : vector<8x32xf32>
      %100 = arith.negf %99 : vector<8x32xf32>
      %101 = math.exp %100 : vector<8x32xf32>
      %cst_79 = arith.constant 1.000000e+00 : f32
      %102 = vector.broadcast %cst_79 : f32 to vector<8x32xf32>
      %103 = arith.addf %102, %101 : vector<8x32xf32>
      %104 = arith.divf %102, %103 : vector<8x32xf32>
      %c0_80 = arith.constant 0 : index
      %c0_81 = arith.constant 0 : index
      %105 = vector.load %arg11[%c0_80, %c0_81] : memref<32x32xf32, #tpu.memory_space<vmem>>, vector<32x32xf32>
      %cst_82 = arith.constant dense<0.000000e+00> : vector<8x32xf32>
      %106 = tpu.matmul %85, %105, %cst_82 {dimension_numbers = #tpu.dot_dimension_numbers<[1], [0], [0], [1], [0, 0, 1, 1], [], []>} : vector<8x32xf32>, vector<32x32xf32>, vector<8x32xf32> -> vector<8x32xf32>
      %107 = vector.broadcast %28 : vector<1x32xf32> to vector<8x32xf32>
      %108 = arith.addf %106, %107 : vector<8x32xf32>
      %109 = arith.mulf %96, %108 : vector<8x32xf32>
      %110 = arith.addf %88, %109 : vector<8x32xf32>
      %111 = math.tanh %110 : vector<8x32xf32>
      %cst_83 = arith.constant 1.000000e+00 : f32
      %112 = vector.broadcast %cst_83 : f32 to vector<8x32xf32>
      %113 = arith.subf %112, %104 : vector<8x32xf32>
      %114 = arith.mulf %113, %111 : vector<8x32xf32>
      %115 = arith.mulf %104, %85 : vector<8x32xf32>
      %116 = arith.addf %114, %115 : vector<8x32xf32>
      %c3_i32_84 = arith.constant 3 : i32
      %117 = vector.broadcast %c3_i32_84 : i32 to vector<8x1xi32>
      %118 = arith.cmpi sgt, %1, %117 : vector<8x1xi32>
      %119 = vector.shape_cast %118 : vector<8x1xi1> to vector<8x1xi1>
      %120 = vector.broadcast %119 : vector<8x1xi1> to vector<8x32xi1>
      %121 = arith.select %120, %116, %85 : vector<8x32xi1>, vector<8x32xf32>
      %c0_85 = arith.constant 0 : index
      %c0_86 = arith.constant 0 : index
      %122 = vector.load %arg21[%c0_85, %c0_86] : memref<8x32xf32, #tpu.memory_space<vmem>>, vector<8x32xf32>
      tpu.vector_store %arg21[%c0_85, %c0_86], %121 {strides = array<i32>} : memref<8x32xf32, #tpu.memory_space<vmem>>, vector<8x32xf32>,
    } else {
    }
    %c4_i32 = arith.constant 4 : i32
    %41 = arith.cmpi sgt, %0, %c4_i32 : i32
    %42 = arith.extui %41 : i1 to i32
    %c0_i32_39 = arith.constant 0 : i32
    %43 = arith.cmpi ne, %42, %c0_i32_39 : i32
    scf.if %43 {
      %c0_65 = arith.constant 0 : index
      %c0_66 = arith.constant 0 : index
      %85 = vector.load %arg21[%c0_65, %c0_66] : memref<8x32xf32, #tpu.memory_space<vmem>>, vector<8x32xf32>
      %c4 = arith.constant 4 : index
      %c0_67 = arith.constant 0 : index
      %86 = tpu.strided_load %arg22[%c4, %c0_67] {strides = array<i32: 8, 1>} : memref<64x32xf32, #tpu.memory_space<vmem>>, vector<8x32xf32>
      %c4_68 = arith.constant 4 : index
      %c0_69 = arith.constant 0 : index
      %87 = tpu.strided_load %arg23[%c4_68, %c0_69] {strides = array<i32: 8, 1>} : memref<64x32xf32, #tpu.memory_space<vmem>>, vector<8x32xf32>
      %c4_70 = arith.constant 4 : index
      %c0_71 = arith.constant 0 : index
      %88 = tpu.strided_load %arg24[%c4_70, %c0_71] {strides = array<i32: 8, 1>} : memref<64x32xf32, #tpu.memory_space<vmem>>, vector<8x32xf32>
      %c0_72 = arith.constant 0 : index
      %c0_73 = arith.constant 0 : index
      %89 = vector.load %arg9[%c0_72, %c0_73] : memref<32x32xf32, #tpu.memory_space<vmem>>, vector<32x32xf32>
      %cst_74 = arith.constant dense<0.000000e+00> : vector<8x32xf32>
      %90 = tpu.matmul %85, %89, %cst_74 {dimension_numbers = #tpu.dot_dimension_numbers<[1], [0], [0], [1], [0, 0, 1, 1], [], []>} : vector<8x32xf32>, vector<32x32xf32>, vector<8x32xf32> -> vector<8x32xf32>
      %91 = arith.addf %86, %90 : vector<8x32xf32>
      %92 = arith.negf %91 : vector<8x32xf32>
      %93 = math.exp %92 : vector<8x32xf32>
      %cst_75 = arith.constant 1.000000e+00 : f32
      %94 = vector.broadcast %cst_75 : f32 to vector<8x32xf32>
      %95 = arith.addf %94, %93 : vector<8x32xf32>
      %96 = arith.divf %94, %95 : vector<8x32xf32>
      %c0_76 = arith.constant 0 : index
      %c0_77 = arith.constant 0 : index
      %97 = vector.load %arg10[%c0_76, %c0_77] : memref<32x32xf32, #tpu.memory_space<vmem>>, vector<32x32xf32>
      %cst_78 = arith.constant dense<0.000000e+00> : vector<8x32xf32>
      %98 = tpu.matmul %85, %97, %cst_78 {dimension_numbers = #tpu.dot_dimension_numbers<[1], [0], [0], [1], [0, 0, 1, 1], [], []>} : vector<8x32xf32>, vector<32x32xf32>, vector<8x32xf32> -> vector<8x32xf32>
      %99 = arith.addf %87, %98 : vector<8x32xf32>
      %100 = arith.negf %99 : vector<8x32xf32>
      %101 = math.exp %100 : vector<8x32xf32>
      %cst_79 = arith.constant 1.000000e+00 : f32
      %102 = vector.broadcast %cst_79 : f32 to vector<8x32xf32>
      %103 = arith.addf %102, %101 : vector<8x32xf32>
      %104 = arith.divf %102, %103 : vector<8x32xf32>
      %c0_80 = arith.constant 0 : index
      %c0_81 = arith.constant 0 : index
      %105 = vector.load %arg11[%c0_80, %c0_81] : memref<32x32xf32, #tpu.memory_space<vmem>>, vector<32x32xf32>
      %cst_82 = arith.constant dense<0.000000e+00> : vector<8x32xf32>
      %106 = tpu.matmul %85, %105, %cst_82 {dimension_numbers = #tpu.dot_dimension_numbers<[1], [0], [0], [1], [0, 0, 1, 1], [], []>} : vector<8x32xf32>, vector<32x32xf32>, vector<8x32xf32> -> vector<8x32xf32>
      %107 = vector.broadcast %28 : vector<1x32xf32> to vector<8x32xf32>
      %108 = arith.addf %106, %107 : vector<8x32xf32>
      %109 = arith.mulf %96, %108 : vector<8x32xf32>
      %110 = arith.addf %88, %109 : vector<8x32xf32>
      %111 = math.tanh %110 : vector<8x32xf32>
      %cst_83 = arith.constant 1.000000e+00 : f32
      %112 = vector.broadcast %cst_83 : f32 to vector<8x32xf32>
      %113 = arith.subf %112, %104 : vector<8x32xf32>
      %114 = arith.mulf %113, %111 : vector<8x32xf32>
      %115 = arith.mulf %104, %85 : vector<8x32xf32>
      %116 = arith.addf %114, %115 : vector<8x32xf32>
      %c4_i32_84 = arith.constant 4 : i32
      %117 = vector.broadcast %c4_i32_84 : i32 to vector<8x1xi32>
      %118 = arith.cmpi sgt, %1, %117 : vector<8x1xi32>
      %119 = vector.shape_cast %118 : vector<8x1xi1> to vector<8x1xi1>
      %120 = vector.broadcast %119 : vector<8x1xi1> to vector<8x32xi1>
      %121 = arith.select %120, %116, %85 : vector<8x32xi1>, vector<8x32xf32>
      %c0_85 = arith.constant 0 : index
      %c0_86 = arith.constant 0 : index
      %122 = vector.load %arg21[%c0_85, %c0_86] : memref<8x32xf32, #tpu.memory_space<vmem>>, vector<8x32xf32>
      tpu.vector_store %arg21[%c0_85, %c0_86], %121 {strides = array<i32>} : memref<8x32xf32, #tpu.memory_space<vmem>>, vector<8x32xf32>,
    } else {
    }
    %c5_i32 = arith.constant 5 : i32
    %44 = arith.cmpi sgt, %0, %c5_i32 : i32
    %45 = arith.extui %44 : i1 to i32
    %c0_i32_40 = arith.constant 0 : i32
    %46 = arith.cmpi ne, %45, %c0_i32_40 : i32
    scf.if %46 {
      %c0_65 = arith.constant 0 : index
      %c0_66 = arith.constant 0 : index
      %85 = vector.load %arg21[%c0_65, %c0_66] : memref<8x32xf32, #tpu.memory_space<vmem>>, vector<8x32xf32>
      %c5 = arith.constant 5 : index
      %c0_67 = arith.constant 0 : index
      %86 = tpu.strided_load %arg22[%c5, %c0_67] {strides = array<i32: 8, 1>} : memref<64x32xf32, #tpu.memory_space<vmem>>, vector<8x32xf32>
      %c5_68 = arith.constant 5 : index
      %c0_69 = arith.constant 0 : index
      %87 = tpu.strided_load %arg23[%c5_68, %c0_69] {strides = array<i32: 8, 1>} : memref<64x32xf32, #tpu.memory_space<vmem>>, vector<8x32xf32>
      %c5_70 = arith.constant 5 : index
      %c0_71 = arith.constant 0 : index
      %88 = tpu.strided_load %arg24[%c5_70, %c0_71] {strides = array<i32: 8, 1>} : memref<64x32xf32, #tpu.memory_space<vmem>>, vector<8x32xf32>
      %c0_72 = arith.constant 0 : index
      %c0_73 = arith.constant 0 : index
      %89 = vector.load %arg9[%c0_72, %c0_73] : memref<32x32xf32, #tpu.memory_space<vmem>>, vector<32x32xf32>
      %cst_74 = arith.constant dense<0.000000e+00> : vector<8x32xf32>
      %90 = tpu.matmul %85, %89, %cst_74 {dimension_numbers = #tpu.dot_dimension_numbers<[1], [0], [0], [1], [0, 0, 1, 1], [], []>} : vector<8x32xf32>, vector<32x32xf32>, vector<8x32xf32> -> vector<8x32xf32>
      %91 = arith.addf %86, %90 : vector<8x32xf32>
      %92 = arith.negf %91 : vector<8x32xf32>
      %93 = math.exp %92 : vector<8x32xf32>
      %cst_75 = arith.constant 1.000000e+00 : f32
      %94 = vector.broadcast %cst_75 : f32 to vector<8x32xf32>
      %95 = arith.addf %94, %93 : vector<8x32xf32>
      %96 = arith.divf %94, %95 : vector<8x32xf32>
      %c0_76 = arith.constant 0 : index
      %c0_77 = arith.constant 0 : index
      %97 = vector.load %arg10[%c0_76, %c0_77] : memref<32x32xf32, #tpu.memory_space<vmem>>, vector<32x32xf32>
      %cst_78 = arith.constant dense<0.000000e+00> : vector<8x32xf32>
      %98 = tpu.matmul %85, %97, %cst_78 {dimension_numbers = #tpu.dot_dimension_numbers<[1], [0], [0], [1], [0, 0, 1, 1], [], []>} : vector<8x32xf32>, vector<32x32xf32>, vector<8x32xf32> -> vector<8x32xf32>
      %99 = arith.addf %87, %98 : vector<8x32xf32>
      %100 = arith.negf %99 : vector<8x32xf32>
      %101 = math.exp %100 : vector<8x32xf32>
      %cst_79 = arith.constant 1.000000e+00 : f32
      %102 = vector.broadcast %cst_79 : f32 to vector<8x32xf32>
      %103 = arith.addf %102, %101 : vector<8x32xf32>
      %104 = arith.divf %102, %103 : vector<8x32xf32>
      %c0_80 = arith.constant 0 : index
      %c0_81 = arith.constant 0 : index
      %105 = vector.load %arg11[%c0_80, %c0_81] : memref<32x32xf32, #tpu.memory_space<vmem>>, vector<32x32xf32>
      %cst_82 = arith.constant dense<0.000000e+00> : vector<8x32xf32>
      %106 = tpu.matmul %85, %105, %cst_82 {dimension_numbers = #tpu.dot_dimension_numbers<[1], [0], [0], [1], [0, 0, 1, 1], [], []>} : vector<8x32xf32>, vector<32x32xf32>, vector<8x32xf32> -> vector<8x32xf32>
      %107 = vector.broadcast %28 : vector<1x32xf32> to vector<8x32xf32>
      %108 = arith.addf %106, %107 : vector<8x32xf32>
      %109 = arith.mulf %96, %108 : vector<8x32xf32>
      %110 = arith.addf %88, %109 : vector<8x32xf32>
      %111 = math.tanh %110 : vector<8x32xf32>
      %cst_83 = arith.constant 1.000000e+00 : f32
      %112 = vector.broadcast %cst_83 : f32 to vector<8x32xf32>
      %113 = arith.subf %112, %104 : vector<8x32xf32>
      %114 = arith.mulf %113, %111 : vector<8x32xf32>
      %115 = arith.mulf %104, %85 : vector<8x32xf32>
      %116 = arith.addf %114, %115 : vector<8x32xf32>
      %c5_i32_84 = arith.constant 5 : i32
      %117 = vector.broadcast %c5_i32_84 : i32 to vector<8x1xi32>
      %118 = arith.cmpi sgt, %1, %117 : vector<8x1xi32>
      %119 = vector.shape_cast %118 : vector<8x1xi1> to vector<8x1xi1>
      %120 = vector.broadcast %119 : vector<8x1xi1> to vector<8x32xi1>
      %121 = arith.select %120, %116, %85 : vector<8x32xi1>, vector<8x32xf32>
      %c0_85 = arith.constant 0 : index
      %c0_86 = arith.constant 0 : index
      %122 = vector.load %arg21[%c0_85, %c0_86] : memref<8x32xf32, #tpu.memory_space<vmem>>, vector<8x32xf32>
      tpu.vector_store %arg21[%c0_85, %c0_86], %121 {strides = array<i32>} : memref<8x32xf32, #tpu.memory_space<vmem>>, vector<8x32xf32>,
    } else {
    }
    %c6_i32 = arith.constant 6 : i32
    %47 = arith.cmpi sgt, %0, %c6_i32 : i32
    %48 = arith.extui %47 : i1 to i32
    %c0_i32_41 = arith.constant 0 : i32
    %49 = arith.cmpi ne, %48, %c0_i32_41 : i32
    scf.if %49 {
      %c0_65 = arith.constant 0 : index
      %c0_66 = arith.constant 0 : index
      %85 = vector.load %arg21[%c0_65, %c0_66] : memref<8x32xf32, #tpu.memory_space<vmem>>, vector<8x32xf32>
      %c6 = arith.constant 6 : index
      %c0_67 = arith.constant 0 : index
      %86 = tpu.strided_load %arg22[%c6, %c0_67] {strides = array<i32: 8, 1>} : memref<64x32xf32, #tpu.memory_space<vmem>>, vector<8x32xf32>
      %c6_68 = arith.constant 6 : index
      %c0_69 = arith.constant 0 : index
      %87 = tpu.strided_load %arg23[%c6_68, %c0_69] {strides = array<i32: 8, 1>} : memref<64x32xf32, #tpu.memory_space<vmem>>, vector<8x32xf32>
      %c6_70 = arith.constant 6 : index
      %c0_71 = arith.constant 0 : index
      %88 = tpu.strided_load %arg24[%c6_70, %c0_71] {strides = array<i32: 8, 1>} : memref<64x32xf32, #tpu.memory_space<vmem>>, vector<8x32xf32>
      %c0_72 = arith.constant 0 : index
      %c0_73 = arith.constant 0 : index
      %89 = vector.load %arg9[%c0_72, %c0_73] : memref<32x32xf32, #tpu.memory_space<vmem>>, vector<32x32xf32>
      %cst_74 = arith.constant dense<0.000000e+00> : vector<8x32xf32>
      %90 = tpu.matmul %85, %89, %cst_74 {dimension_numbers = #tpu.dot_dimension_numbers<[1], [0], [0], [1], [0, 0, 1, 1], [], []>} : vector<8x32xf32>, vector<32x32xf32>, vector<8x32xf32> -> vector<8x32xf32>
      %91 = arith.addf %86, %90 : vector<8x32xf32>
      %92 = arith.negf %91 : vector<8x32xf32>
      %93 = math.exp %92 : vector<8x32xf32>
      %cst_75 = arith.constant 1.000000e+00 : f32
      %94 = vector.broadcast %cst_75 : f32 to vector<8x32xf32>
      %95 = arith.addf %94, %93 : vector<8x32xf32>
      %96 = arith.divf %94, %95 : vector<8x32xf32>
      %c0_76 = arith.constant 0 : index
      %c0_77 = arith.constant 0 : index
      %97 = vector.load %arg10[%c0_76, %c0_77] : memref<32x32xf32, #tpu.memory_space<vmem>>, vector<32x32xf32>
      %cst_78 = arith.constant dense<0.000000e+00> : vector<8x32xf32>
      %98 = tpu.matmul %85, %97, %cst_78 {dimension_numbers = #tpu.dot_dimension_numbers<[1], [0], [0], [1], [0, 0, 1, 1], [], []>} : vector<8x32xf32>, vector<32x32xf32>, vector<8x32xf32> -> vector<8x32xf32>
      %99 = arith.addf %87, %98 : vector<8x32xf32>
      %100 = arith.negf %99 : vector<8x32xf32>
      %101 = math.exp %100 : vector<8x32xf32>
      %cst_79 = arith.constant 1.000000e+00 : f32
      %102 = vector.broadcast %cst_79 : f32 to vector<8x32xf32>
      %103 = arith.addf %102, %101 : vector<8x32xf32>
      %104 = arith.divf %102, %103 : vector<8x32xf32>
      %c0_80 = arith.constant 0 : index
      %c0_81 = arith.constant 0 : index
      %105 = vector.load %arg11[%c0_80, %c0_81] : memref<32x32xf32, #tpu.memory_space<vmem>>, vector<32x32xf32>
      %cst_82 = arith.constant dense<0.000000e+00> : vector<8x32xf32>
      %106 = tpu.matmul %85, %105, %cst_82 {dimension_numbers = #tpu.dot_dimension_numbers<[1], [0], [0], [1], [0, 0, 1, 1], [], []>} : vector<8x32xf32>, vector<32x32xf32>, vector<8x32xf32> -> vector<8x32xf32>
      %107 = vector.broadcast %28 : vector<1x32xf32> to vector<8x32xf32>
      %108 = arith.addf %106, %107 : vector<8x32xf32>
      %109 = arith.mulf %96, %108 : vector<8x32xf32>
      %110 = arith.addf %88, %109 : vector<8x32xf32>
      %111 = math.tanh %110 : vector<8x32xf32>
      %cst_83 = arith.constant 1.000000e+00 : f32
      %112 = vector.broadcast %cst_83 : f32 to vector<8x32xf32>
      %113 = arith.subf %112, %104 : vector<8x32xf32>
      %114 = arith.mulf %113, %111 : vector<8x32xf32>
      %115 = arith.mulf %104, %85 : vector<8x32xf32>
      %116 = arith.addf %114, %115 : vector<8x32xf32>
      %c6_i32_84 = arith.constant 6 : i32
      %117 = vector.broadcast %c6_i32_84 : i32 to vector<8x1xi32>
      %118 = arith.cmpi sgt, %1, %117 : vector<8x1xi32>
      %119 = vector.shape_cast %118 : vector<8x1xi1> to vector<8x1xi1>
      %120 = vector.broadcast %119 : vector<8x1xi1> to vector<8x32xi1>
      %121 = arith.select %120, %116, %85 : vector<8x32xi1>, vector<8x32xf32>
      %c0_85 = arith.constant 0 : index
      %c0_86 = arith.constant 0 : index
      %122 = vector.load %arg21[%c0_85, %c0_86] : memref<8x32xf32, #tpu.memory_space<vmem>>, vector<8x32xf32>
      tpu.vector_store %arg21[%c0_85, %c0_86], %121 {strides = array<i32>} : memref<8x32xf32, #tpu.memory_space<vmem>>, vector<8x32xf32>,
    } else {
    }
    %c7_i32 = arith.constant 7 : i32
    %50 = arith.cmpi sgt, %0, %c7_i32 : i32
    %51 = arith.extui %50 : i1 to i32
    %c0_i32_42 = arith.constant 0 : i32
    %52 = arith.cmpi ne, %51, %c0_i32_42 : i32
    scf.if %52 {
      %c0_65 = arith.constant 0 : index
      %c0_66 = arith.constant 0 : index
      %85 = vector.load %arg21[%c0_65, %c0_66] : memref<8x32xf32, #tpu.memory_space<vmem>>, vector<8x32xf32>
      %c7 = arith.constant 7 : index
      %c0_67 = arith.constant 0 : index
      %86 = tpu.strided_load %arg22[%c7, %c0_67] {strides = array<i32: 8, 1>} : memref<64x32xf32, #tpu.memory_space<vmem>>, vector<8x32xf32>
      %c7_68 = arith.constant 7 : index
      %c0_69 = arith.constant 0 : index
      %87 = tpu.strided_load %arg23[%c7_68, %c0_69] {strides = array<i32: 8, 1>} : memref<64x32xf32, #tpu.memory_space<vmem>>, vector<8x32xf32>
      %c7_70 = arith.constant 7 : index
      %c0_71 = arith.constant 0 : index
      %88 = tpu.strided_load %arg24[%c7_70, %c0_71] {strides = array<i32: 8, 1>} : memref<64x32xf32, #tpu.memory_space<vmem>>, vector<8x32xf32>
      %c0_72 = arith.constant 0 : index
      %c0_73 = arith.constant 0 : index
      %89 = vector.load %arg9[%c0_72, %c0_73] : memref<32x32xf32, #tpu.memory_space<vmem>>, vector<32x32xf32>
      %cst_74 = arith.constant dense<0.000000e+00> : vector<8x32xf32>
      %90 = tpu.matmul %85, %89, %cst_74 {dimension_numbers = #tpu.dot_dimension_numbers<[1], [0], [0], [1], [0, 0, 1, 1], [], []>} : vector<8x32xf32>, vector<32x32xf32>, vector<8x32xf32> -> vector<8x32xf32>
      %91 = arith.addf %86, %90 : vector<8x32xf32>
      %92 = arith.negf %91 : vector<8x32xf32>
      %93 = math.exp %92 : vector<8x32xf32>
      %cst_75 = arith.constant 1.000000e+00 : f32
      %94 = vector.broadcast %cst_75 : f32 to vector<8x32xf32>
      %95 = arith.addf %94, %93 : vector<8x32xf32>
      %96 = arith.divf %94, %95 : vector<8x32xf32>
      %c0_76 = arith.constant 0 : index
      %c0_77 = arith.constant 0 : index
      %97 = vector.load %arg10[%c0_76, %c0_77] : memref<32x32xf32, #tpu.memory_space<vmem>>, vector<32x32xf32>
      %cst_78 = arith.constant dense<0.000000e+00> : vector<8x32xf32>
      %98 = tpu.matmul %85, %97, %cst_78 {dimension_numbers = #tpu.dot_dimension_numbers<[1], [0], [0], [1], [0, 0, 1, 1], [], []>} : vector<8x32xf32>, vector<32x32xf32>, vector<8x32xf32> -> vector<8x32xf32>
      %99 = arith.addf %87, %98 : vector<8x32xf32>
      %100 = arith.negf %99 : vector<8x32xf32>
      %101 = math.exp %100 : vector<8x32xf32>
      %cst_79 = arith.constant 1.000000e+00 : f32
      %102 = vector.broadcast %cst_79 : f32 to vector<8x32xf32>
      %103 = arith.addf %102, %101 : vector<8x32xf32>
      %104 = arith.divf %102, %103 : vector<8x32xf32>
      %c0_80 = arith.constant 0 : index
      %c0_81 = arith.constant 0 : index
      %105 = vector.load %arg11[%c0_80, %c0_81] : memref<32x32xf32, #tpu.memory_space<vmem>>, vector<32x32xf32>
      %cst_82 = arith.constant dense<0.000000e+00> : vector<8x32xf32>
      %106 = tpu.matmul %85, %105, %cst_82 {dimension_numbers = #tpu.dot_dimension_numbers<[1], [0], [0], [1], [0, 0, 1, 1], [], []>} : vector<8x32xf32>, vector<32x32xf32>, vector<8x32xf32> -> vector<8x32xf32>
      %107 = vector.broadcast %28 : vector<1x32xf32> to vector<8x32xf32>
      %108 = arith.addf %106, %107 : vector<8x32xf32>
      %109 = arith.mulf %96, %108 : vector<8x32xf32>
      %110 = arith.addf %88, %109 : vector<8x32xf32>
      %111 = math.tanh %110 : vector<8x32xf32>
      %cst_83 = arith.constant 1.000000e+00 : f32
      %112 = vector.broadcast %cst_83 : f32 to vector<8x32xf32>
      %113 = arith.subf %112, %104 : vector<8x32xf32>
      %114 = arith.mulf %113, %111 : vector<8x32xf32>
      %115 = arith.mulf %104, %85 : vector<8x32xf32>
      %116 = arith.addf %114, %115 : vector<8x32xf32>
      %c7_i32_84 = arith.constant 7 : i32
      %117 = vector.broadcast %c7_i32_84 : i32 to vector<8x1xi32>
      %118 = arith.cmpi sgt, %1, %117 : vector<8x1xi32>
      %119 = vector.shape_cast %118 : vector<8x1xi1> to vector<8x1xi1>
      %120 = vector.broadcast %119 : vector<8x1xi1> to vector<8x32xi1>
      %121 = arith.select %120, %116, %85 : vector<8x32xi1>, vector<8x32xf32>
      %c0_85 = arith.constant 0 : index
      %c0_86 = arith.constant 0 : index
      %122 = vector.load %arg21[%c0_85, %c0_86] : memref<8x32xf32, #tpu.memory_space<vmem>>, vector<8x32xf32>
      tpu.vector_store %arg21[%c0_85, %c0_86], %121 {strides = array<i32>} : memref<8x32xf32, #tpu.memory_space<vmem>>, vector<8x32xf32>,
    } else {
    }
    %c0_43 = arith.constant 0 : index
    %c0_44 = arith.constant 0 : index
    %53 = vector.load %arg21[%c0_43, %c0_44] : memref<8x32xf32, #tpu.memory_space<vmem>>, vector<8x32xf32>
    %c0_45 = arith.constant 0 : index
    %c0_46 = arith.constant 0 : index
    %54 = vector.load %arg16[%c0_45, %c0_46] : memref<32x16xf32, #tpu.memory_space<vmem>>, vector<32x16xf32>
    %c0_47 = arith.constant 0 : index
    %c0_48 = arith.constant 0 : index
    %55 = vector.load %arg17[%c0_47, %c0_48] : memref<1x16xf32, #tpu.memory_space<vmem>>, vector<1x16xf32>
    %cst_49 = arith.constant dense<0.000000e+00> : vector<8x16xf32>
    %56 = tpu.matmul %53, %54, %cst_49 {dimension_numbers = #tpu.dot_dimension_numbers<[1], [0], [0], [1], [0, 0, 1, 1], [], []>} : vector<8x32xf32>, vector<32x16xf32>, vector<8x16xf32> -> vector<8x16xf32>
    %57 = vector.broadcast %55 : vector<1x16xf32> to vector<8x16xf32>
    %58 = arith.addf %56, %57 : vector<8x16xf32>
    %cst_50 = arith.constant 0.000000e+00 : f32
    %59 = vector.broadcast %cst_50 : f32 to vector<8x16xf32>
    %60 = arith.cmpf ogt, %58, %59 : vector<8x16xf32>
    %61 = math.exp %58 : vector<8x16xf32>
    %cst_51 = arith.constant 1.000000e+00 : f32
    %62 = vector.broadcast %cst_51 : f32 to vector<8x16xf32>
    %63 = arith.subf %61, %62 : vector<8x16xf32>
    %cst_52 = arith.constant 1.67326319 : f32
    %64 = vector.broadcast %cst_52 : f32 to vector<8x16xf32>
    %65 = arith.mulf %64, %63 : vector<8x16xf32>
    %66 = arith.select %60, %58, %65 : vector<8x16xi1>, vector<8x16xf32>
    %cst_53 = arith.constant 1.05070102 : f32
    %67 = vector.broadcast %cst_53 : f32 to vector<8x16xf32>
    %68 = arith.mulf %67, %66 : vector<8x16xf32>
    %c0_54 = arith.constant 0 : index
    %c0_55 = arith.constant 0 : index
    %69 = vector.load %arg18[%c0_54, %c0_55] : memref<16x1xf32, #tpu.memory_space<vmem>>, vector<16x1xf32>
    %c0_56 = arith.constant 0 : index
    %c0_57 = arith.constant 0 : index
    %70 = vector.load %arg19[%c0_56, %c0_57] : memref<1x1xf32, #tpu.memory_space<vmem>>, vector<1x1xf32>
    %cst_58 = arith.constant dense<0.000000e+00> : vector<8x1xf32>
    %71 = tpu.matmul %68, %69, %cst_58 {dimension_numbers = #tpu.dot_dimension_numbers<[1], [0], [0], [1], [0, 0, 1, 1], [], []>} : vector<8x16xf32>, vector<16x1xf32>, vector<8x1xf32> -> vector<8x1xf32>
    %72 = vector.broadcast %70 : vector<1x1xf32> to vector<8x1xf32>
    %73 = arith.addf %71, %72 : vector<8x1xf32>
    %cst_59 = arith.constant 0.000000e+00 : f32
    %74 = vector.broadcast %cst_59 : f32 to vector<8x1xf32>
    %75 = arith.cmpf ogt, %73, %74 : vector<8x1xf32>
    %76 = math.exp %73 : vector<8x1xf32>
    %cst_60 = arith.constant 1.000000e+00 : f32
    %77 = vector.broadcast %cst_60 : f32 to vector<8x1xf32>
    %78 = arith.subf %76, %77 : vector<8x1xf32>
    %cst_61 = arith.constant 1.67326319 : f32
    %79 = vector.broadcast %cst_61 : f32 to vector<8x1xf32>
    %80 = arith.mulf %79, %78 : vector<8x1xf32>
    %81 = arith.select %75, %73, %80 : vector<8x1xi1>, vector<8x1xf32>
    %cst_62 = arith.constant 1.05070102 : f32
    %82 = vector.broadcast %cst_62 : f32 to vector<8x1xf32>
    %83 = arith.mulf %82, %81 : vector<8x1xf32>
    %c0_63 = arith.constant 0 : index
    %c0_64 = arith.constant 0 : index
    %84 = vector.load %arg20[%c0_63, %c0_64] : memref<8x1xf32, #tpu.memory_space<vmem>>, vector<8x1xf32>
    tpu.vector_store %arg20[%c0_63, %c0_64], %83 {strides = array<i32>} : memref<8x1xf32, #tpu.memory_space<vmem>>, vector<8x1xf32>,
    return
  }
}

</mosaic_0001>

<bundles_post_ra>
// kernel: point_seq_hazard_forward.1
= control target key start
LH: loop header
LB: loop body
LE: loop exit
PB: predicated region body
PF: predicated region fallthrough
CT: control target
= control target key end

     0   :  { %vm200_vm0 = vcmask 1045504   ;;  %vm175_vm1 = vcmask 48128   ;;  %vm83_vm2 = vcmask 1044480   ;;  %v3822_v4 = vmov 0.0   ;;  %s4499_s6 = inlined_call_operand.vmem [shape: f32[6,32], index: 6, kind: input, shape index: {}]   ;;  %s4500_s2 = inlined_call_operand.vmem [shape: f32[64,6], index: 2, kind: input, shape index: {}]   ;;  %s4501_s8 = inlined_call_operand.vmem [shape: f32[6,32], index: 8, kind: input, shape index: {}]   ;;  %s4502_s0 = inlined_call_operand.<no memory space> [shape: s32[1], index: 0, kind: input, shape index: {}]   ;;  %s4503_s1 = inlined_call_operand.vmem [shape: s32[8,1], index: 1, kind: input, shape index: {}]   ;;  %s4504_s9 = inlined_call_operand.vmem [shape: f32[32,32], index: 9, kind: input, shape index: {}]   ;;  %s4505_s10 = inlined_call_operand.vmem [shape: f32[32,32], index: 10, kind: input, shape index: {}]   ;;  %s4506_s11 = inlined_call_operand.vmem [shape: f32[32,32], index: 11, kind: input, shape index: {}]   ;;  %s4507_s16 = inlined_call_operand.vmem [shape: f32[32,16], index: 16, kind: input, shape index: {}]   ;;  %s4508_s17 = inlined_call_operand.vmem [shape: f32[1,16], index: 17, kind: input, shape index: {}]   ;;  %s4509_s18 = inlined_call_operand.vmem [shape: f32[16,1], index: 18, kind: input, shape index: {}]   ;;  %s4510_s19 = inlined_call_operand.<no memory space> [shape: f32[1,1], index: 19, kind: input, shape index: {}]   ;;  %s4511_s20 = inlined_call_operand.vmem [shape: f32[8,1], index: 20, kind: output, shape index: {}]   ;;  %s4512_s4 = inlined_call_operand.vmem [shape: f32[5,32], index: 4, kind: input, shape index: {}]   ;;  %s4513_s3 = inlined_call_operand.vmem [shape: f32[8,5], index: 3, kind: input, shape index: {}]   ;;  %s4514_s7 = inlined_call_operand.vmem [shape: f32[6,32], index: 7, kind: input, shape index: {}]   ;;  %s4515_s15 = inlined_call_operand.vmem [shape: f32[1,32], index: 15, kind: input, shape index: {}]   ;;  %s4516_s12 = inlined_call_operand.vmem [shape: f32[1,32], index: 12, kind: input, shape index: {}]   ;;  %s4517_s5 = inlined_call_operand.vmem [shape: f32[1,32], index: 5, kind: input, shape index: {}]   ;;  %s4518_s13 = inlined_call_operand.vmem [shape: f32[1,32], index: 13, kind: input, shape index: {}]   ;;  %s4519_s14 = inlined_call_operand.vmem [shape: f32[1,32], index: 14, kind: input, shape index: {}]  }
   0x1   :  { %4521 = sst [smem:[#allocation8_spill]] %s4499_s6  ;;  %v26_v3 = vstv %s4510_s19  ;;  %3211 = vmatprep.subr.mxu0 %v3822_v4  ;;  %v71_v7 = vld [vmem:[%s4512_s4] sm:$0x1f]  ;;  %vm79_vm3 = vcmask 39936   ;;  %vm3823_vm4 = vmmov 0   ;;  %vm157_vm5 = vcmask 261120  }
   0x2   :  { %4522 = sst [smem:[#allocation9_spill]] %s4500_s2  ;;  %s4526_s23 = sld [smem:[#allocation8_spill]]  ;;  %27 = vst [vmem:[#allocation7] sm:$0x1] %v26_v3  ;;  %3212 = vmatpush3.msk.msra.mxu0 %vm83_vm2, %v71_v7  ;;  %v70_v9 = vld [vmem:[%s4513_s3] sm:$0xff]  ;;  %3213 = vmatprep.mubr.msk.f32.mxu0 %vm3823_vm4, %v3822_v4 }
   0x3   :  { %4523 = sst [smem:[#allocation10_spill]] %s4501_s8  ;;  %s4527_s25 = sld [smem:[#allocation9_spill]]  ;;  %3214 = vmatmul.mubr.msk.f32.vlgmr.msra.gmra.mrb[0].mxu0 %vm79_vm3, %v70_v9  ;;  %v317_v13 = vld [vmem:[%s4514_s7] sm:$0x3f] }
   0x4   :  { %4524 = sst [smem:[#allocation11_spill]] %s4502_s0  ;;  %s4528_s30 = sld [smem:[#allocation10_spill]]  ;;  %v4047_v16 = vld [vmem:[%s4515_s15] sm:$0x1] }
   0x5   :  { %4525 = sst [smem:[#allocation12_spill]] %s4503_s1  ;;  %v2970_v17 = vld [vmem:[%s4516_s12] ss:$0 sm:$0xff]  ;;  %s4530_s26 = sld [smem:[#allocation11_spill]] }
   0x6   :  { %s4529_s2 = sld [smem:[#allocation12_spill]]  ;;  %v2967_v19 = vld [vmem:[%s4517_s5] ss:$0 sm:$0xff] }
   0x7   :  { %v2980_v35 = vld [vmem:[%s4518_s13] ss:$0 sm:$0xff] }
   0x8   :  { %v167_v0 = vld [vmem:[%s4526_s23] sm:$0x3f] }
   0x9   :  { %v161_v1 = vld [vmem:[%s4527_s25 + $0x10] sm:$0xff]  ;;  %v162_v2 = vld [vmem:[%s4527_s25 + $0x18] sm:$0xff]  ;;  %3693 = vmatprep.subr.msk.mxu1 %vm200_vm0, %v167_v0  ;;  %v163_v8 = vld [vmem:[%s4527_s25 + $0x20] sm:$0xff]  ;;  %3216 = vmatprep.subr.msk.mxu0 %vm200_vm0, %v167_v0 }
   0xa   :  { %3221 = vmatprep.mubr.msk.f32.mxu1 %vm175_vm1, %v161_v1  ;;  %v441_v5 = vld [vmem:[%s4528_s30] sm:$0x3f]  ;;  %3694 = vmatpush3.msk.msra.mxu1 %vm200_vm0, %v167_v0  ;;  %v164_v11 = vld [vmem:[%s4527_s25 + $0x28] sm:$0xff]  ;;  %v165_v12 = vld [vmem:[%s4527_s25 + $0x30] sm:$0xff] }
   0xb   :  { %3222 = vmatmul.mubr.msk.f32.vlgmr.msra.gmra.mrb[0].mxu1 %vm175_vm1, %v162_v2  ;;  %3244 = vmatprep.subr.msk.mxu1 %vm200_vm0, %v441_v5  ;;  %v159_v10 = vld [vmem:[%s4527_s25] sm:$0xff]  ;;  %v160_v14 = vld [vmem:[%s4527_s25 + $0x8] sm:$0xff]  ;;  %v166_v15 = vld [vmem:[%s4527_s25 + $0x38] sm:$0xff]  ;;  %p3000_p0 = scmp.le.s32.totalorder %s4530_s26, 0 }
   0xc   :  { %v3983_v6 = vld [vmem:[%s4529_s2] sm:$0xff]  ;;  %3245 = vmatpush3.msk.msra.mxu1 %vm200_vm0, %v441_v5  ;;  %3224 = vmatprep.mubr.msk.f32.mxu1 %vm175_vm1, %v163_v8  ;;  %vm3825_vm6 = vmmov (!%p3000_p0), 0  }
   0xd   :  { %3218 = vmatprep.mubr.msk.f32.mxu0 %vm175_vm1, %v159_v10  ;;  %3217 = vmatpush3.msk.msra.mxu0 %vm200_vm0, %v167_v0  ;;  %v2990_v40 = vld [vmem:[%s4519_s14] ss:$0 sm:$0xff]  ;;  %vm832_vm7 = vcmp.gt.s32.totalorder (!%p3000_p0), %v3983_v6, 0 }
   0xe   :  { %3230 = vmatprep.subr.msk.mxu0 %vm200_vm0, %v317_v13  ;;  %3219 = vmatmul.mubr.msk.f32.vlgmr.msra.gmra.mrb[2].mxu0 %vm175_vm1, %v160_v14 }
   0xf   :  { %3225 = vmatmul.mubr.msk.f32.gmra.mrb[2].mxu1 %vm175_vm1, %v164_v11  ;;  %3231 = vmatpush3.msk.msra.mxu0 %vm200_vm0, %v317_v13  ;;  %v3824_v13 = vmov (!%p3000_p0), 0.0|0.0  }
  0x10   :  { %3227 = vmatprep.mubr.msk.f32.mxu1 %vm175_vm1, %v165_v12  ;;  %3232 = vmatprep.mubr.msk.f32.mxu0 %vm175_vm1, %v159_v10 }
  0x11   :  { %3540 = vmatprep.subr.bf16.mxu0 (!%p3000_p0), %v3824_v13  ;;  %3546 = vmatprep.subr.bf16.mxu1 (!%p3000_p0), %v3824_v13 }
  0x12   :  { %3233 = vmatmul.mubr.msk.f32.vlgmr.msra.gmra.mrb[4].mxu0 %vm175_vm1, %v160_v14 }
  0x13   :  { %3228 = vmatmul.mubr.msk.f32.gmra.mrb[4].mxu1 %vm175_vm1, %v166_v15  ;;  %3235 = vmatprep.mubr.msk.f32.mxu0 %vm175_vm1, %v161_v1 }
  0x14   :  { %3246 = vmatprep.mubr.msk.f32.mxu1 %vm175_vm1, %v159_v10  ;;  %v580_v10 = vld [vmem:[%s4504_s9] sm:$0xff] (!%p3000_p0) }
  0x16   :  { %3236 = vmatmul.mubr.msk.f32.gmra.mrb[6].mxu0 %vm175_vm1, %v162_v2 }
  0x17   :  { %3247 = vmatmul.mubr.msk.f32.vlgmr.msra.gmra.mrb[6].mxu1 %vm175_vm1, %v160_v14  ;;  %3238 = vmatprep.mubr.msk.f32.mxu0 %vm175_vm1, %v163_v8 }
  0x18   :  { %3249 = vmatprep.mubr.msk.f32.mxu1 %vm175_vm1, %v161_v1 }
  0x1a   :  { %3239 = vmatmul.mubr.msk.f32.gmra.mrb[8].mxu0 %vm175_vm1, %v164_v11 }
  0x1b   :  { %3250 = vmatmul.mubr.msk.f32.gmra.mrb[8].mxu1 %vm175_vm1, %v162_v2  ;;  %3241 = vmatprep.mubr.msk.f32.mxu0 %vm175_vm1, %v165_v12 }
  0x1c   :  { %3252 = vmatprep.mubr.msk.f32.mxu1 %vm175_vm1, %v163_v8 }
  0x1e   :  { %3242 = vmatmul.mubr.msk.f32.gmra.mrb[10].mxu0 %vm175_vm1, %v166_v15 }
  0x1f   :  { %3253 = vmatmul.mubr.msk.f32.gmra.mrb[10].mxu1 %vm175_vm1, %v164_v11  ;;  %v581_v11 = vld [vmem:[%s4504_s9 + $0x8] sm:$0xff] (!%p3000_p0) }
  0x20   :  { %3255 = vmatprep.mubr.msk.f32.mxu1 %vm175_vm1, %v165_v12  ;;  %v582_v12 = vld [vmem:[%s4504_s9 + $0x10] sm:$0xff] (!%p3000_p0)  ;;  %v3541_v14 = vpack.c.bf16 (!%p3000_p0), %v581_v11, %v580_v10 }
  0x22   :  { %3542 = vmatpush3.bf16.msra.mxu0 (!%p3000_p0), %v3541_v14 }
  0x23   :  { %3256 = vmatmul.mubr.msk.f32.gmra.mrb[12].mxu1 %vm175_vm1, %v166_v15  ;;  %v583_v15 = vld [vmem:[%s4504_s9 + $0x18] sm:$0xff] (!%p3000_p0)  ;;  %3543 = vmatprep.subr.bf16.mxu0 (!%p3000_p0), %v3824_v13 }
  0xd6   :  { %v153_v23 = vpop.f32.mrb[0].mxu0 }
  0xd7   :  { %v154_v24 = vadd.f32 %v2967_v19, %v153_v23  ;;  %v3215_v25 = vpop.f32.mrb[1].mxu0  ;;  %v665_v19 = vld [vmem:[%s4505_s10 + $0x8] sm:$0xff] (!%p3000_p0) }
  0xd9   :  { %158 = vst.msk [vmem:[#allocation2] sm:$0xff] %vm157_vm5, %v154_v24  ;;  %v3544_v24 = vpack.c.bf16 (!%p3000_p0), %v583_v15, %v582_v12 }
  0xdb   :  { %3545 = vmatpush3.bf16.msra.mxu0 (!%p3000_p0), %v3544_v24 }
  0xdc   :  { %3552 = vmatprep.subr.bf16.mxu0 (!%p3000_p0), %v3824_v13 }
  0xde   :  { %v3223_v18 = vpop.f32.mrb[0].mxu1 }
  0xdf   :  { %v286_v20 = vadd.f32 %v3223_v18, %v2970_v17  ;;  %v280_v21 = vpop.f32.mrb[1].mxu1  ;;  %v664_v18 = vld [vmem:[%s4505_s10] sm:$0xff] (!%p3000_p0) }
  0xe0   :  { %v281_v22 = vadd.f32 %v2970_v17, %v280_v21  ;;  %v667_v21 = vld [vmem:[%s4505_s10 + $0x18] sm:$0xff] (!%p3000_p0)  ;;  %v3547_v25 = vpack.c.bf16 (!%p3000_p0), %v665_v19, %v664_v18 }
  0xe1   :  { %312 = vst.msk [vmem:[#allocation3 + $0x18] sm:$0xff] %vm157_vm5, %v286_v20  ;;  %v3220_v30 = vpop.f32.mrb[2].mxu0  ;;  %v666_v20 = vld [vmem:[%s4505_s10 + $0x10] sm:$0xff] (!%p3000_p0) }
  0xe2   :  { %311 = vst.msk [vmem:[#allocation3 + $0x10] sm:$0xff] %vm157_vm5, %v281_v22  ;;  %v3226_v26 = vpop.f32.mrb[2].mxu1  ;;  %v276_v31 = vadd.f32 %v3220_v30, %v2970_v17  ;;  %v270_v32 = vpop.f32.mrb[3].mxu0  ;;  %v3827_v22 = vmov (!%p3000_p0), 0   ;;  %3548 = vmatpush3.bf16.msra.mxu1 (!%p3000_p0), %v3547_v25 }
  0xe3   :  { %v296_v27 = vadd.f32 %v3226_v26, %v2970_v17  ;;  %v290_v28 = vpop.f32.mrb[3].mxu1  ;;  %v271_v34 = vadd.f32 %v2970_v17, %v270_v32  ;;  %v833_v23 = vsel (!%p3000_p0), %vm832_vm7, 1, %v3827_v22  ;;  %3730 = vset.pattern.permute.xlu0 (!%p3000_p0), %v3827_v22  ;;  %v745_v26 = vld [vmem:[%s4506_s11] sm:$0xff] (!%p3000_p0)  ;;  %3549 = vmatprep.subr.bf16.mxu1 (!%p3000_p0), %v3824_v13  ;;  %v748_v32 = vld [vmem:[%s4506_s11 + $0x18] sm:$0xff] (!%p3000_p0) }
  0xe4   :  { %v291_v29 = vadd.f32 %v2970_v17, %v290_v28  ;;  %310 = vst.msk [vmem:[#allocation3 + $0x8] sm:$0xff] %vm157_vm5, %v276_v31  ;;  %835 = vperm.xlu0 (!%p3000_p0), %3730, %v833_v23   ;;  %v3550_v28 = vpack.c.bf16 (!%p3000_p0), %v667_v21, %v666_v20  ;;  %v747_v31 = vld [vmem:[%s4506_s11 + $0x10] sm:$0xff] (!%p3000_p0) }
  0xe5   :  { %314 = vst.msk [vmem:[#allocation3 + $0x28] sm:$0xff] %vm157_vm5, %v296_v27  ;;  %309 = vst.msk [vmem:[#allocation3] sm:$0xff] %vm157_vm5, %v271_v34  ;;  %v3234_v39 = vpop.f32.mrb[4].mxu0  ;;  %v746_v27 = vld [vmem:[%s4506_s11 + $0x8] sm:$0xff] (!%p3000_p0) }
  0xe6   :  { %313 = vst.msk [vmem:[#allocation3 + $0x20] sm:$0xff] %vm157_vm5, %v291_v29  ;;  %v3229_v33 = vpop.f32.mrb[4].mxu1  ;;  %v400_v41 = vadd.f32 %v3234_v39, %v2980_v35  ;;  %v394_v42 = vpop.f32.mrb[5].mxu0  ;;  %v570_v29 = vld [vmem:[#allocation2] sm:$0xff] (!%p3000_p0)  ;;  %v3553_v30 = vpack.c.bf16 (!%p3000_p0), %v746_v27, %v745_v26  ;;  %3551 = vmatpush3.bf16.msra.mxu1 (!%p3000_p0), %v3550_v28 }
  0xe7   :  { %v306_v36 = vadd.f32 %v3229_v33, %v2970_v17  ;;  %v300_v37 = vpop.f32.mrb[5].mxu1  ;;  %v395_v44 = vadd.f32 %v2980_v35, %v394_v42  ;;  %v3556_v33 = vpack.c.bf16 (!%p3000_p0), %v748_v32, %v747_v31 }
  0xe8   :  { %v301_v38 = vadd.f32 %v2970_v17, %v300_v37  ;;  %434 = vst.msk [vmem:[#allocation4 + $0x8] sm:$0xff] %vm157_vm5, %v400_v41  ;;  %v3826_v17 = vmov (!%p3000_p0), 0.0  }
  0xe9   :  { %316 = vst.msk [vmem:[#allocation3 + $0x38] sm:$0xff] %vm157_vm5, %v306_v36  ;;  %433 = vst.msk [vmem:[#allocation4] sm:$0xff] %vm157_vm5, %v395_v44  ;;  %v3237_v48 = vpop.f32.mrb[6].mxu0  ;;  %3266 = vmatprep.mubr.msk.f32.mxu0 (!%p3000_p0), %vm3825_vm6, %v3826_v17  ;;  %3277 = vmatprep.mubr.msk.f32.mxu1 (!%p3000_p0), %vm3825_vm6, %v3826_v17 }
  0xea   :  { %315 = vst.msk [vmem:[#allocation3 + $0x30] sm:$0xff] %vm157_vm5, %v301_v38  ;;  %v3248_v43 = vpop.f32.mrb[6].mxu1  ;;  %v410_v49 = vadd.f32 %v3237_v48, %v2980_v35  ;;  %v404_v50 = vpop.f32.mrb[7].mxu0  ;;  %3267 = vmatmul.mubr.msk.f32.vlgmr.msra.gmra.mrb[0].mxu0 (!%p3000_p0), %vm157_vm5, %v570_v29  ;;  %3278 = vmatmul.mubr.msk.f32.vlgmr.msra.gmra.mrb[0].mxu1 (!%p3000_p0), %vm157_vm5, %v570_v29 }
  0xeb   :  { %v524_v45 = vadd.f32 %v3248_v43, %v2990_v40  ;;  %v518_v46 = vpop.f32.mrb[7].mxu1  ;;  %v405_v52 = vadd.f32 %v2980_v35, %v404_v50  ;;  %3554 = vmatpush3.bf16.msra.mxu0 (!%p3000_p0), %v3553_v30  ;;  %3288 = vmatprep.mubr.msk.f32.mxu0 (!%p3000_p0), %vm3825_vm6, %v3826_v17 }
  0xec   :  { %v519_v47 = vadd.f32 %v2990_v40, %v518_v46  ;;  %436 = vst.msk [vmem:[#allocation4 + $0x18] sm:$0xff] %vm157_vm5, %v410_v49  ;;  %3555 = vmatprep.subr.bf16.mxu0 (!%p3000_p0), %v3824_v13  ;;  %v571_v34 = vld [vmem:[#allocation3] ss:$8 sm:$0xf] (!%p3000_p0)  ;;  %v750_v49 = vlaneseq (!%p3000_p0) }
  0xed   :  { %558 = vst.msk [vmem:[#allocation5 + $0x8] sm:$0xff] %vm157_vm5, %v524_v45  ;;  %435 = vst.msk [vmem:[#allocation4 + $0x10] sm:$0xff] %vm157_vm5, %v405_v52  ;;  %v3240_v56 = vpop.f32.mrb[8].mxu0 }
  0xee   :  { %557 = vst.msk [vmem:[#allocation5] sm:$0xff] %vm157_vm5, %v519_v47  ;;  %v3251_v51 = vpop.f32.mrb[8].mxu1  ;;  %v420_v57 = vadd.f32 %v3240_v56, %v2980_v35  ;;  %v414_v58 = vpop.f32.mrb[9].mxu0 }
  0xef   :  { %v534_v53 = vadd.f32 %v3251_v51, %v2990_v40  ;;  %v528_v54 = vpop.f32.mrb[9].mxu1  ;;  %v415_v60 = vadd.f32 %v2980_v35, %v414_v58  ;;  %3557 = vmatpush3.bf16.msra.mxu0 (!%p3000_p0), %v3556_v33  ;;  %v751_v51 = vshrl.u32 (!%p3000_p0), %v750_v49, 7 }
  0xf0   :  { %v529_v55 = vadd.f32 %v2990_v40, %v528_v54  ;;  %438 = vst.msk [vmem:[#allocation4 + $0x28] sm:$0xff] %vm157_vm5, %v420_v57 }
  0xf1   :  { %560 = vst.msk [vmem:[#allocation5 + $0x18] sm:$0xff] %vm157_vm5, %v534_v53  ;;  %437 = vst.msk [vmem:[#allocation4 + $0x20] sm:$0xff] %vm157_vm5, %v415_v60  ;;  %v3243_v0 = vpop.f32.mrb[10].mxu0  ;;  %v752_v54 = vsub.s32 (!%p3000_p0), 0, %v751_v51 }
  0xf2   :  { %559 = vst.msk [vmem:[#allocation5 + $0x10] sm:$0xff] %vm157_vm5, %v529_v55  ;;  %v3254_v59 = vpop.f32.mrb[10].mxu1  ;;  %v430_v1 = vadd.f32 %v3243_v0, %v2980_v35  ;;  %v424_v2 = vpop.f32.mrb[11].mxu0  ;;  %3289 = vmatmul.mubr.msk.f32.vlgmr.msra.gmra.mrb[2].mxu0 (!%p3000_p0), %vm157_vm5, %v570_v29 }
  0xf3   :  { %v544_v61 = vadd.f32 %v3254_v59, %v2990_v40  ;;  %v538_v62 = vpop.f32.mrb[11].mxu1  ;;  %v425_v5 = vadd.f32 %v2980_v35, %v424_v2  ;;  %v572_v35 = vld [vmem:[#allocation3] ss:$8 sm:$0xf0] (!%p3000_p0)  ;;  %v753_v56 = vrot.slane (!%p3000_p0), %v4047_v16, %v752_v54 }
  0xf4   :  { %v539_v63 = vadd.f32 %v2990_v40, %v538_v62  ;;  %440 = vst.msk [vmem:[#allocation4 + $0x38] sm:$0xff] %vm157_vm5, %v430_v1  ;;  %569 = sbr.rel (%p3000_p0) target bundleno = 495 (0x1ef), region = 85  ;;  %v574_v36 = vld [vmem:[#allocation4] ss:$8 sm:$0xf] (!%p3000_p0)  ;;  %v573_v38 = vor.u32 (!%p3000_p0), %v572_v35, %v571_v34 }
  0xf5   :  { %562 = vst.msk [vmem:[#allocation5 + $0x28] sm:$0xff] %vm157_vm5, %v544_v61  ;;  %439 = vst.msk [vmem:[#allocation4 + $0x30] sm:$0xff] %vm157_vm5, %v425_v5 }
  0xf6   :  { %561 = vst.msk [vmem:[#allocation5 + $0x20] sm:$0xff] %vm157_vm5, %v539_v63  ;;  %v3257_v3 = vpop.f32.mrb[12].mxu1 }
  0xf7   :  { %v554_v7 = vadd.f32 %v3257_v3, %v2990_v40  ;;  %v548_v8 = vpop.f32.mrb[13].mxu1 }
  0xf8   :  { %v549_v9 = vadd.f32 %v2990_v40, %v548_v8 }
  0xf9   :  { %564 = vst.msk [vmem:[#allocation5 + $0x38] sm:$0xff] %vm157_vm5, %v554_v7  ;;  %v577_v58 = vld [vmem:[#allocation5] ss:$8 sm:$0xf] (!%p3000_p0) }
  0xfa   :  { %563 = vst.msk [vmem:[#allocation5 + $0x30] sm:$0xff] %vm157_vm5, %v549_v9 }
  0xfc   :  { %v575_v37 = vld [vmem:[#allocation4] ss:$8 sm:$0xf0] }
  0xfd   :  { %v576_v39 = vor.u32 %v575_v37, %v574_v36 }
 0x101   :  { %v578_v59 = vld [vmem:[#allocation5] ss:$8 sm:$0xf0] }
 0x102   :  { %v579_v61 = vor.u32 %v578_v59, %v577_v58 }
 0x163   :  { %v836_v3 = vpop.permute.xlu0 %835 }
 0x164   :  { %vm837_vm8 = vcmp.eq.s32.totalorder %v836_v3, 1 }
 0x1bd   :  { %v653_v40 = vpop.f32.mrb[0].mxu0  ;;  %v734_v43 = vpop.f32.mrb[0].mxu1 }
 0x1be   :  { %v657_v41 = vadd.f32 %v653_v40, %v573_v38  ;;  %v3268_v42 = vpop.f32.mrb[1].mxu0  ;;  %v738_v45 = vadd.f32 %v734_v43, %v576_v39  ;;  %v3279_v46 = vpop.f32.mrb[1].mxu1 }
 0x1c0   :  { %v3002_v44 = vmul.f32 -1.442695, %v657_v41  ;;  %v3004_v47 = vmul.f32 -1.442695, %v738_v45 }
 0x1c2   :  { %3731 = vpow2.f32 %v3002_v44 }
 0x1c3   :  { %3733 = vpow2.f32 %v3004_v47 }
 0x1c5   :  { %v821_v48 = vpop.f32.mrb[2].mxu0 }
 0x1c6   :  { %v3290_v50 = vpop.f32.mrb[3].mxu0  ;;  %v822_v60 = vadd.f32 %v821_v48, %v753_v56 }
 0x1cc   :  { %v3732_v52 = vpop.eup %3731 }
 0x1cd   :  { %v661_v53 = vadd.f32 1.0, %v3732_v52  ;;  %v3734_v55 = vpop.eup %3733 }
 0x1ce   :  { %v742_v57 = vadd.f32 1.0, %v3734_v55 }
 0x1cf   :  { %3735 = vrcp.f32 %v661_v53 }
 0x1d0   :  { %3737 = vrcp.f32 %v742_v57 }
 0x1d9   :  { %v3736_v62 = vpop.eup %3735 }
 0x1da   :  { %v825_v63 = vmul.f32 %v3736_v62, %v822_v60  ;;  %v3738_v1 = vpop.eup %3737 }
 0x1db   :  { %v828_v2 = vsub.f32 1.0, %v3738_v1  ;;  %v830_v8 = vmul.f32 %v3738_v1, %v570_v29 }
 0x1dc   :  { %v826_v0 = vadd.f32 %v825_v63, %v579_v61 }
 0x1de   :  { %3739 = vtanh.f32 %v826_v0 }
 0x1e8   :  { %v3740_v5 = vpop.eup %3739 }
 0x1e9   :  { %v829_v7 = vmul.f32 %v3740_v5, %v828_v2 }
 0x1eb   :  { %v831_v9 = vadd.f32 %v830_v8, %v829_v7 }
 0x1ed   :  { %v838_v10 = vsel %vm837_vm8, %v831_v9, %v570_v29 }
 0x1ee   :  { %839 = vst.msk [vmem:[#allocation2] sm:$0xff] %vm157_vm5, %v838_v10 }
 0x1ef PF:  { %s4531_s28 = sld [smem:[#allocation11_spill]] }
 0x1f5   :  { %p3006_p1 = scmp.le.s32.totalorder %s4531_s28, 1 }
 0x1f6   :  { %v857_v11 = vld [vmem:[%s4504_s9] sm:$0xff] (!%p3006_p1)  ;;  %v858_v12 = vld [vmem:[%s4504_s9 + $0x8] sm:$0xff] (!%p3006_p1)  ;;  %v859_v13 = vld [vmem:[%s4504_s9 + $0x10] sm:$0xff] (!%p3006_p1)  ;;  %v3828_v14 = vmov (!%p3006_p1), 0.0|0.0   ;;  %vm3829_vm9 = vmmov (!%p3006_p1), 0   ;;  %v3830_v18 = vmov (!%p3006_p1), 0.0   ;;  %v1027_v50 = vlaneseq (!%p3006_p1) }
 0x1f7   :  { %843 = sbr.rel (%p3006_p1) target bundleno = 773 (0x305), region = 89  ;;  %3558 = vmatprep.subr.bf16.mxu0 (!%p3006_p1), %v3828_v14  ;;  %v3559_v15 = vpack.c.bf16 (!%p3006_p1), %v858_v12, %v857_v11  ;;  %v860_v17 = vld [vmem:[%s4504_s9 + $0x18] sm:$0xff] (!%p3006_p1)  ;;  %3299 = vmatprep.mubr.msk.f32.mxu0 (!%p3006_p1), %vm3829_vm9, %v3830_v18  ;;  %v941_v19 = vld [vmem:[%s4505_s10] sm:$0xff] (!%p3006_p1)  ;;  %vm1109_vm10 = vcmp.gt.s32.totalorder (!%p3006_p1), %v3983_v6, 1  ;;  %v942_v20 = vld [vmem:[%s4505_s10 + $0x8] sm:$0xff] (!%p3006_p1)  ;;  %v3831_v23 = vmov (!%p3006_p1), 0  }
 0x1f8   :  { %3564 = vmatprep.subr.bf16.mxu1 (!%p3006_p1), %v3828_v14  ;;  %v943_v21 = vld [vmem:[%s4505_s10 + $0x10] sm:$0xff] (!%p3006_p1)  ;;  %v944_v22 = vld [vmem:[%s4505_s10 + $0x18] sm:$0xff] (!%p3006_p1)  ;;  %3310 = vmatprep.mubr.msk.f32.mxu1 (!%p3006_p1), %vm3829_vm9, %v3830_v18  ;;  %v1110_v24 = vsel (!%p3006_p1), %vm1109_vm10, 1, %v3831_v23  ;;  %v3562_v25 = vpack.c.bf16 (!%p3006_p1), %v860_v17, %v859_v13  ;;  %v3565_v26 = vpack.c.bf16 (!%p3006_p1), %v942_v20, %v941_v19  ;;  %v1022_v27 = vld [vmem:[%s4506_s11] sm:$0xff] (!%p3006_p1)  ;;  %v1028_v52 = vshrl.u32 (!%p3006_p1), %v1027_v50, 7 }
 0x1f9   :  { %3560 = vmatpush3.bf16.msra.mxu0 (!%p3006_p1), %v3559_v15  ;;  %3741 = vset.pattern.permute.xlu0 (!%p3006_p1), %v3831_v23  ;;  %v1023_v28 = vld [vmem:[%s4506_s11 + $0x8] sm:$0xff] (!%p3006_p1)  ;;  %v3568_v29 = vpack.c.bf16 (!%p3006_p1), %v944_v22, %v943_v21  ;;  %v844_v30 = vld [vmem:[#allocation2] sm:$0xff] (!%p3006_p1)  ;;  %v1024_v32 = vld [vmem:[%s4506_s11 + $0x10] sm:$0xff] (!%p3006_p1) }
 0x1fa   :  { %3561 = vmatprep.subr.bf16.mxu0 (!%p3006_p1), %v3828_v14  ;;  %1112 = vperm.xlu0 (!%p3006_p1), %3741, %v1110_v24   ;;  %v3571_v31 = vpack.c.bf16 (!%p3006_p1), %v1023_v28, %v1022_v27  ;;  %v1025_v33 = vld [vmem:[%s4506_s11 + $0x18] sm:$0xff] (!%p3006_p1)  ;;  %v1029_v55 = vsub.s32 (!%p3006_p1), 0, %v1028_v52 }
 0x1fb   :  { %3566 = vmatpush3.bf16.msra.mxu1 (!%p3006_p1), %v3565_v26  ;;  %v3574_v34 = vpack.c.bf16 (!%p3006_p1), %v1025_v33, %v1024_v32  ;;  %v846_v35 = vld [vmem:[#allocation3 + $0x1] ss:$8 sm:$0xf] (!%p3006_p1) }
 0x1fc   :  { %3567 = vmatprep.subr.bf16.mxu1 (!%p3006_p1), %v3828_v14  ;;  %v847_v36 = vld [vmem:[#allocation3 + $0x1] ss:$8 sm:$0xf0] (!%p3006_p1)  ;;  %v1030_v57 = vrot.slane (!%p3006_p1), %v4047_v16, %v1029_v55 }
 0x1fd   :  { %3563 = vmatpush3.bf16.msra.mxu0 (!%p3006_p1), %v3562_v25  ;;  %v850_v37 = vld [vmem:[#allocation4 + $0x1] ss:$8 sm:$0xf] (!%p3006_p1)  ;;  %v848_v39 = vor.u32 (!%p3006_p1), %v847_v36, %v846_v35 }
 0x1fe   :  { %3570 = vmatprep.subr.bf16.mxu0 %v3828_v14  ;;  %v851_v38 = vld [vmem:[#allocation4 + $0x1] ss:$8 sm:$0xf0] }
 0x1ff   :  { %3569 = vmatpush3.bf16.msra.mxu1 %v3568_v29  ;;  %v852_v40 = vor.u32 %v851_v38, %v850_v37  ;;  %v854_v59 = vld [vmem:[#allocation5 + $0x1] ss:$8 sm:$0xf] }
 0x200   :  { %3300 = vmatmul.mubr.msk.f32.vlgmr.msra.gmra.mrb[0].mxu0 %vm157_vm5, %v844_v30  ;;  %v855_v60 = vld [vmem:[#allocation5 + $0x1] ss:$8 sm:$0xf0] }
 0x201   :  { %3572 = vmatpush3.bf16.msra.mxu0 %v3571_v31  ;;  %3321 = vmatprep.mubr.msk.f32.mxu0 %vm3829_vm9, %v3830_v18  ;;  %v856_v62 = vor.u32 %v855_v60, %v854_v59 }
 0x202   :  { %3311 = vmatmul.mubr.msk.f32.vlgmr.msra.gmra.mrb[0].mxu1 %vm157_vm5, %v844_v30  ;;  %3573 = vmatprep.subr.bf16.mxu0 %v3828_v14 }
 0x205   :  { %3575 = vmatpush3.bf16.msra.mxu0 %v3574_v34 }
 0x208   :  { %3322 = vmatmul.mubr.msk.f32.vlgmr.msra.gmra.mrb[2].mxu0 %vm157_vm5, %v844_v30 }
 0x279   :  { %v1113_v5 = vpop.permute.xlu0 %1112 }
 0x27a   :  { %vm1114_vm11 = vcmp.eq.s32.totalorder %v1113_v5, 1 }
 0x2d3   :  { %v930_v41 = vpop.f32.mrb[0].mxu0 }
 0x2d4   :  { %v934_v42 = vadd.f32 %v930_v41, %v848_v39  ;;  %v3301_v43 = vpop.f32.mrb[1].mxu0 }
 0x2d5   :  { %v1011_v44 = vpop.f32.mrb[0].mxu1 }
 0x2d6   :  { %v3008_v45 = vmul.f32 -1.442695, %v934_v42  ;;  %v1015_v46 = vadd.f32 %v1011_v44, %v852_v40  ;;  %v3312_v47 = vpop.f32.mrb[1].mxu1 }
 0x2d8   :  { %3742 = vpow2.f32 %v3008_v45  ;;  %v3010_v48 = vmul.f32 -1.442695, %v1015_v46 }
 0x2da   :  { %3744 = vpow2.f32 %v3010_v48 }
 0x2db   :  { %v1098_v49 = vpop.f32.mrb[2].mxu0 }
 0x2dc   :  { %v3323_v51 = vpop.f32.mrb[3].mxu0  ;;  %v1099_v61 = vadd.f32 %v1098_v49, %v1030_v57 }
 0x2e2   :  { %v3743_v53 = vpop.eup %3742 }
 0x2e3   :  { %v938_v54 = vadd.f32 1.0, %v3743_v53 }
 0x2e4   :  { %v3745_v56 = vpop.eup %3744 }
 0x2e5   :  { %3746 = vrcp.f32 %v938_v54  ;;  %v1019_v58 = vadd.f32 1.0, %v3745_v56 }
 0x2e7   :  { %3748 = vrcp.f32 %v1019_v58 }
 0x2ef   :  { %v3747_v63 = vpop.eup %3746 }
 0x2f0   :  { %v1102_v0 = vmul.f32 %v3747_v63, %v1099_v61 }
 0x2f1   :  { %v3749_v2 = vpop.eup %3748 }
 0x2f2   :  { %v1103_v1 = vadd.f32 %v1102_v0, %v856_v62  ;;  %v1105_v3 = vsub.f32 1.0, %v3749_v2  ;;  %v1107_v9 = vmul.f32 %v3749_v2, %v844_v30 }
 0x2f4   :  { %3750 = vtanh.f32 %v1103_v1 }
 0x2fe   :  { %v3751_v7 = vpop.eup %3750 }
 0x2ff   :  { %v1106_v8 = vmul.f32 %v3751_v7, %v1105_v3 }
 0x301   :  { %v1108_v10 = vadd.f32 %v1107_v9, %v1106_v8 }
 0x303   :  { %v1115_v11 = vsel %vm1114_vm11, %v1108_v10, %v844_v30 }
 0x304   :  { %1116 = vst.msk [vmem:[#allocation2] sm:$0xff] %vm157_vm5, %v1115_v11 }
 0x305 PF:  { %s4532_s29 = sld [smem:[#allocation11_spill]] }
 0x30b   :  { %p3012_p2 = scmp.le.s32.totalorder %s4532_s29, 2 }
 0x30c   :  { %v1134_v12 = vld [vmem:[%s4504_s9] sm:$0xff] (!%p3012_p2)  ;;  %v1135_v13 = vld [vmem:[%s4504_s9 + $0x8] sm:$0xff] (!%p3012_p2)  ;;  %v1136_v14 = vld [vmem:[%s4504_s9 + $0x10] sm:$0xff] (!%p3012_p2)  ;;  %v3832_v15 = vmov (!%p3012_p2), 0.0|0.0   ;;  %vm3833_vm12 = vmmov (!%p3012_p2), 0   ;;  %v3834_v19 = vmov (!%p3012_p2), 0.0   ;;  %v1304_v51 = vlaneseq (!%p3012_p2) }
 0x30d   :  { %1120 = sbr.rel (%p3012_p2) target bundleno = 1051 (0x41b), region = 93  ;;  %3576 = vmatprep.subr.bf16.mxu0 (!%p3012_p2), %v3832_v15  ;;  %v3577_v17 = vpack.c.bf16 (!%p3012_p2), %v1135_v13, %v1134_v12  ;;  %v1137_v18 = vld [vmem:[%s4504_s9 + $0x18] sm:$0xff] (!%p3012_p2)  ;;  %3332 = vmatprep.mubr.msk.f32.mxu0 (!%p3012_p2), %vm3833_vm12, %v3834_v19  ;;  %v1218_v20 = vld [vmem:[%s4505_s10] sm:$0xff] (!%p3012_p2)  ;;  %vm1386_vm13 = vcmp.gt.s32.totalorder (!%p3012_p2), %v3983_v6, 2  ;;  %v1219_v21 = vld [vmem:[%s4505_s10 + $0x8] sm:$0xff] (!%p3012_p2)  ;;  %v3835_v24 = vmov (!%p3012_p2), 0  }
 0x30e   :  { %3582 = vmatprep.subr.bf16.mxu1 (!%p3012_p2), %v3832_v15  ;;  %v1220_v22 = vld [vmem:[%s4505_s10 + $0x10] sm:$0xff] (!%p3012_p2)  ;;  %v1221_v23 = vld [vmem:[%s4505_s10 + $0x18] sm:$0xff] (!%p3012_p2)  ;;  %3343 = vmatprep.mubr.msk.f32.mxu1 (!%p3012_p2), %vm3833_vm12, %v3834_v19  ;;  %v1387_v25 = vsel (!%p3012_p2), %vm1386_vm13, 1, %v3835_v24  ;;  %v3580_v26 = vpack.c.bf16 (!%p3012_p2), %v1137_v18, %v1136_v14  ;;  %v3583_v27 = vpack.c.bf16 (!%p3012_p2), %v1219_v21, %v1218_v20  ;;  %v1299_v28 = vld [vmem:[%s4506_s11] sm:$0xff] (!%p3012_p2)  ;;  %v1305_v53 = vshrl.u32 (!%p3012_p2), %v1304_v51, 7 }
 0x30f   :  { %3578 = vmatpush3.bf16.msra.mxu0 (!%p3012_p2), %v3577_v17  ;;  %3752 = vset.pattern.permute.xlu0 (!%p3012_p2), %v3835_v24  ;;  %v1300_v29 = vld [vmem:[%s4506_s11 + $0x8] sm:$0xff] (!%p3012_p2)  ;;  %v3586_v30 = vpack.c.bf16 (!%p3012_p2), %v1221_v23, %v1220_v22  ;;  %v1121_v31 = vld [vmem:[#allocation2] sm:$0xff] (!%p3012_p2)  ;;  %v1301_v33 = vld [vmem:[%s4506_s11 + $0x10] sm:$0xff] (!%p3012_p2) }
 0x310   :  { %3579 = vmatprep.subr.bf16.mxu0 (!%p3012_p2), %v3832_v15  ;;  %1389 = vperm.xlu0 (!%p3012_p2), %3752, %v1387_v25   ;;  %v3589_v32 = vpack.c.bf16 (!%p3012_p2), %v1300_v29, %v1299_v28  ;;  %v1302_v34 = vld [vmem:[%s4506_s11 + $0x18] sm:$0xff] (!%p3012_p2)  ;;  %v1306_v56 = vsub.s32 (!%p3012_p2), 0, %v1305_v53 }
 0x311   :  { %3584 = vmatpush3.bf16.msra.mxu1 (!%p3012_p2), %v3583_v27  ;;  %v3592_v35 = vpack.c.bf16 (!%p3012_p2), %v1302_v34, %v1301_v33  ;;  %v1123_v36 = vld [vmem:[#allocation3 + $0x2] ss:$8 sm:$0xf] (!%p3012_p2) }
 0x312   :  { %3585 = vmatprep.subr.bf16.mxu1 (!%p3012_p2), %v3832_v15  ;;  %v1124_v37 = vld [vmem:[#allocation3 + $0x2] ss:$8 sm:$0xf0] (!%p3012_p2)  ;;  %v1307_v58 = vrot.slane (!%p3012_p2), %v4047_v16, %v1306_v56 }
 0x313   :  { %3581 = vmatpush3.bf16.msra.mxu0 (!%p3012_p2), %v3580_v26  ;;  %v1127_v38 = vld [vmem:[#allocation4 + $0x2] ss:$8 sm:$0xf] (!%p3012_p2)  ;;  %v1125_v40 = vor.u32 (!%p3012_p2), %v1124_v37, %v1123_v36 }
 0x314   :  { %3588 = vmatprep.subr.bf16.mxu0 %v3832_v15  ;;  %v1128_v39 = vld [vmem:[#allocation4 + $0x2] ss:$8 sm:$0xf0] }
 0x315   :  { %3587 = vmatpush3.bf16.msra.mxu1 %v3586_v30  ;;  %v1129_v41 = vor.u32 %v1128_v39, %v1127_v38  ;;  %v1131_v60 = vld [vmem:[#allocation5 + $0x2] ss:$8 sm:$0xf] }
 0x316   :  { %3333 = vmatmul.mubr.msk.f32.vlgmr.msra.gmra.mrb[0].mxu0 %vm157_vm5, %v1121_v31  ;;  %v1132_v61 = vld [vmem:[#allocation5 + $0x2] ss:$8 sm:$0xf0] }
 0x317   :  { %3590 = vmatpush3.bf16.msra.mxu0 %v3589_v32  ;;  %3354 = vmatprep.mubr.msk.f32.mxu0 %vm3833_vm12, %v3834_v19  ;;  %v1133_v63 = vor.u32 %v1132_v61, %v1131_v60 }
 0x318   :  { %3344 = vmatmul.mubr.msk.f32.vlgmr.msra.gmra.mrb[0].mxu1 %vm157_vm5, %v1121_v31  ;;  %3591 = vmatprep.subr.bf16.mxu0 %v3832_v15 }
 0x31b   :  { %3593 = vmatpush3.bf16.msra.mxu0 %v3592_v35 }
 0x31e   :  { %3355 = vmatmul.mubr.msk.f32.vlgmr.msra.gmra.mrb[2].mxu0 %vm157_vm5, %v1121_v31 }
 0x38f   :  { %v1390_v7 = vpop.permute.xlu0 %1389 }
 0x390   :  { %vm1391_vm14 = vcmp.eq.s32.totalorder %v1390_v7, 1 }
 0x3e9   :  { %v1207_v42 = vpop.f32.mrb[0].mxu0 }
 0x3ea   :  { %v1211_v43 = vadd.f32 %v1207_v42, %v1125_v40  ;;  %v3334_v44 = vpop.f32.mrb[1].mxu0 }
 0x3eb   :  { %v1288_v45 = vpop.f32.mrb[0].mxu1 }
 0x3ec   :  { %v3014_v46 = vmul.f32 -1.442695, %v1211_v43  ;;  %v1292_v47 = vadd.f32 %v1288_v45, %v1129_v41  ;;  %v3345_v48 = vpop.f32.mrb[1].mxu1 }
 0x3ee   :  { %3753 = vpow2.f32 %v3014_v46  ;;  %v3016_v49 = vmul.f32 -1.442695, %v1292_v47 }
 0x3f0   :  { %3755 = vpow2.f32 %v3016_v49 }
 0x3f1   :  { %v1375_v50 = vpop.f32.mrb[2].mxu0 }
 0x3f2   :  { %v3356_v52 = vpop.f32.mrb[3].mxu0  ;;  %v1376_v62 = vadd.f32 %v1375_v50, %v1307_v58 }
 0x3f8   :  { %v3754_v54 = vpop.eup %3753 }
 0x3f9   :  { %v1215_v55 = vadd.f32 1.0, %v3754_v54 }
 0x3fa   :  { %v3756_v57 = vpop.eup %3755 }
 0x3fb   :  { %3757 = vrcp.f32 %v1215_v55  ;;  %v1296_v59 = vadd.f32 1.0, %v3756_v57 }
 0x3fd   :  { %3759 = vrcp.f32 %v1296_v59 }
 0x405   :  { %v3758_v0 = vpop.eup %3757 }
 0x406   :  { %v1379_v1 = vmul.f32 %v3758_v0, %v1376_v62 }
 0x407   :  { %v3760_v3 = vpop.eup %3759 }
 0x408   :  { %v1380_v2 = vadd.f32 %v1379_v1, %v1133_v63  ;;  %v1382_v5 = vsub.f32 1.0, %v3760_v3  ;;  %v1384_v10 = vmul.f32 %v3760_v3, %v1121_v31 }
 0x40a   :  { %3761 = vtanh.f32 %v1380_v2 }
 0x414   :  { %v3762_v8 = vpop.eup %3761 }
 0x415   :  { %v1383_v9 = vmul.f32 %v3762_v8, %v1382_v5 }
 0x417   :  { %v1385_v11 = vadd.f32 %v1384_v10, %v1383_v9 }
 0x419   :  { %v1392_v12 = vsel %vm1391_vm14, %v1385_v11, %v1121_v31 }
 0x41a   :  { %1393 = vst.msk [vmem:[#allocation2] sm:$0xff] %vm157_vm5, %v1392_v12 }
 0x41b PF:  { %s4533_s21 = sld [smem:[#allocation11_spill]] }
 0x421   :  { %p3018_p3 = scmp.le.s32.totalorder %s4533_s21, 3 }
 0x422   :  { %v1411_v13 = vld [vmem:[%s4504_s9] sm:$0xff] (!%p3018_p3)  ;;  %v1412_v14 = vld [vmem:[%s4504_s9 + $0x8] sm:$0xff] (!%p3018_p3)  ;;  %v1413_v15 = vld [vmem:[%s4504_s9 + $0x10] sm:$0xff] (!%p3018_p3)  ;;  %v3836_v17 = vmov (!%p3018_p3), 0.0|0.0   ;;  %vm3837_vm15 = vmmov (!%p3018_p3), 0   ;;  %v3838_v20 = vmov (!%p3018_p3), 0.0   ;;  %v1581_v52 = vlaneseq (!%p3018_p3) }
 0x423   :  { %1397 = sbr.rel (%p3018_p3) target bundleno = 1329 (0x531), region = 97  ;;  %3594 = vmatprep.subr.bf16.mxu0 (!%p3018_p3), %v3836_v17  ;;  %v3595_v18 = vpack.c.bf16 (!%p3018_p3), %v1412_v14, %v1411_v13  ;;  %v1414_v19 = vld [vmem:[%s4504_s9 + $0x18] sm:$0xff] (!%p3018_p3)  ;;  %3365 = vmatprep.mubr.msk.f32.mxu0 (!%p3018_p3), %vm3837_vm15, %v3838_v20  ;;  %v1495_v21 = vld [vmem:[%s4505_s10] sm:$0xff] (!%p3018_p3)  ;;  %vm1663_vm0 = vcmp.gt.s32.totalorder (!%p3018_p3), %v3983_v6, 3  ;;  %v1496_v22 = vld [vmem:[%s4505_s10 + $0x8] sm:$0xff] (!%p3018_p3)  ;;  %v3839_v25 = vmov (!%p3018_p3), 0  }
 0x424   :  { %3600 = vmatprep.subr.bf16.mxu1 (!%p3018_p3), %v3836_v17  ;;  %v1497_v23 = vld [vmem:[%s4505_s10 + $0x10] sm:$0xff] (!%p3018_p3)  ;;  %v1498_v24 = vld [vmem:[%s4505_s10 + $0x18] sm:$0xff] (!%p3018_p3)  ;;  %3376 = vmatprep.mubr.msk.f32.mxu1 (!%p3018_p3), %vm3837_vm15, %v3838_v20  ;;  %v1664_v26 = vsel (!%p3018_p3), %vm1663_vm0, 1, %v3839_v25  ;;  %v3598_v27 = vpack.c.bf16 (!%p3018_p3), %v1414_v19, %v1413_v15  ;;  %v3601_v28 = vpack.c.bf16 (!%p3018_p3), %v1496_v22, %v1495_v21  ;;  %v1576_v29 = vld [vmem:[%s4506_s11] sm:$0xff] (!%p3018_p3)  ;;  %v1582_v54 = vshrl.u32 (!%p3018_p3), %v1581_v52, 7 }
 0x425   :  { %3596 = vmatpush3.bf16.msra.mxu0 (!%p3018_p3), %v3595_v18  ;;  %3763 = vset.pattern.permute.xlu0 (!%p3018_p3), %v3839_v25  ;;  %v1577_v30 = vld [vmem:[%s4506_s11 + $0x8] sm:$0xff] (!%p3018_p3)  ;;  %v3604_v31 = vpack.c.bf16 (!%p3018_p3), %v1498_v24, %v1497_v23  ;;  %v1398_v32 = vld [vmem:[#allocation2] sm:$0xff] (!%p3018_p3)  ;;  %v1578_v34 = vld [vmem:[%s4506_s11 + $0x10] sm:$0xff] (!%p3018_p3) }
 0x426   :  { %3597 = vmatprep.subr.bf16.mxu0 (!%p3018_p3), %v3836_v17  ;;  %1666 = vperm.xlu0 (!%p3018_p3), %3763, %v1664_v26   ;;  %v3607_v33 = vpack.c.bf16 (!%p3018_p3), %v1577_v30, %v1576_v29  ;;  %v1579_v35 = vld [vmem:[%s4506_s11 + $0x18] sm:$0xff] (!%p3018_p3)  ;;  %v1583_v57 = vsub.s32 (!%p3018_p3), 0, %v1582_v54 }
 0x427   :  { %3602 = vmatpush3.bf16.msra.mxu1 (!%p3018_p3), %v3601_v28  ;;  %v3610_v36 = vpack.c.bf16 (!%p3018_p3), %v1579_v35, %v1578_v34  ;;  %v1400_v37 = vld [vmem:[#allocation3 + $0x3] ss:$8 sm:$0xf] (!%p3018_p3) }
 0x428   :  { %3603 = vmatprep.subr.bf16.mxu1 (!%p3018_p3), %v3836_v17  ;;  %v1401_v38 = vld [vmem:[#allocation3 + $0x3] ss:$8 sm:$0xf0] (!%p3018_p3)  ;;  %v1584_v59 = vrot.slane (!%p3018_p3), %v4047_v16, %v1583_v57 }
 0x429   :  { %3599 = vmatpush3.bf16.msra.mxu0 (!%p3018_p3), %v3598_v27  ;;  %v1404_v39 = vld [vmem:[#allocation4 + $0x3] ss:$8 sm:$0xf] (!%p3018_p3)  ;;  %v1402_v41 = vor.u32 (!%p3018_p3), %v1401_v38, %v1400_v37 }
 0x42a   :  { %3606 = vmatprep.subr.bf16.mxu0 %v3836_v17  ;;  %v1405_v40 = vld [vmem:[#allocation4 + $0x3] ss:$8 sm:$0xf0] }
 0x42b   :  { %3605 = vmatpush3.bf16.msra.mxu1 %v3604_v31  ;;  %v1406_v42 = vor.u32 %v1405_v40, %v1404_v39  ;;  %v1408_v61 = vld [vmem:[#allocation5 + $0x3] ss:$8 sm:$0xf] }
 0x42c   :  { %3366 = vmatmul.mubr.msk.f32.vlgmr.msra.gmra.mrb[0].mxu0 %vm157_vm5, %v1398_v32  ;;  %v1409_v62 = vld [vmem:[#allocation5 + $0x3] ss:$8 sm:$0xf0] }
 0x42d   :  { %3608 = vmatpush3.bf16.msra.mxu0 %v3607_v33  ;;  %3387 = vmatprep.mubr.msk.f32.mxu0 %vm3837_vm15, %v3838_v20  ;;  %v1410_v0 = vor.u32 %v1409_v62, %v1408_v61 }
 0x42e   :  { %3377 = vmatmul.mubr.msk.f32.vlgmr.msra.gmra.mrb[0].mxu1 %vm157_vm5, %v1398_v32  ;;  %3609 = vmatprep.subr.bf16.mxu0 %v3836_v17 }
 0x431   :  { %3611 = vmatpush3.bf16.msra.mxu0 %v3610_v36 }
 0x434   :  { %3388 = vmatmul.mubr.msk.f32.vlgmr.msra.gmra.mrb[2].mxu0 %vm157_vm5, %v1398_v32 }
 0x4a5   :  { %v1667_v8 = vpop.permute.xlu0 %1666 }
 0x4a6   :  { %vm1668_vm1 = vcmp.eq.s32.totalorder %v1667_v8, 1 }
 0x4ff   :  { %v1484_v43 = vpop.f32.mrb[0].mxu0 }
 0x500   :  { %v1488_v44 = vadd.f32 %v1484_v43, %v1402_v41  ;;  %v3367_v45 = vpop.f32.mrb[1].mxu0 }
 0x501   :  { %v1565_v46 = vpop.f32.mrb[0].mxu1 }
 0x502   :  { %v3020_v47 = vmul.f32 -1.442695, %v1488_v44  ;;  %v1569_v48 = vadd.f32 %v1565_v46, %v1406_v42  ;;  %v3378_v49 = vpop.f32.mrb[1].mxu1 }
 0x504   :  { %3764 = vpow2.f32 %v3020_v47  ;;  %v3022_v50 = vmul.f32 -1.442695, %v1569_v48 }
 0x506   :  { %3766 = vpow2.f32 %v3022_v50 }
 0x507   :  { %v1652_v51 = vpop.f32.mrb[2].mxu0 }
 0x508   :  { %v3389_v53 = vpop.f32.mrb[3].mxu0  ;;  %v1653_v63 = vadd.f32 %v1652_v51, %v1584_v59 }
 0x50e   :  { %v3765_v55 = vpop.eup %3764 }
 0x50f   :  { %v1492_v56 = vadd.f32 1.0, %v3765_v55 }
 0x510   :  { %v3767_v58 = vpop.eup %3766 }
 0x511   :  { %3768 = vrcp.f32 %v1492_v56  ;;  %v1573_v60 = vadd.f32 1.0, %v3767_v58 }
 0x513   :  { %3770 = vrcp.f32 %v1573_v60 }
 0x51b   :  { %v3769_v1 = vpop.eup %3768 }
 0x51c   :  { %v1656_v2 = vmul.f32 %v3769_v1, %v1653_v63 }
 0x51d   :  { %v3771_v5 = vpop.eup %3770 }
 0x51e   :  { %v1657_v3 = vadd.f32 %v1656_v2, %v1410_v0  ;;  %v1659_v7 = vsub.f32 1.0, %v3771_v5  ;;  %v1661_v11 = vmul.f32 %v3771_v5, %v1398_v32 }
 0x520   :  { %3772 = vtanh.f32 %v1657_v3 }
 0x52a   :  { %v3773_v9 = vpop.eup %3772 }
 0x52b   :  { %v1660_v10 = vmul.f32 %v3773_v9, %v1659_v7 }
 0x52d   :  { %v1662_v12 = vadd.f32 %v1661_v11, %v1660_v10 }
 0x52f   :  { %v1669_v13 = vsel %vm1668_vm1, %v1662_v12, %v1398_v32 }
 0x530   :  { %1670 = vst.msk [vmem:[#allocation2] sm:$0xff] %vm157_vm5, %v1669_v13 }
 0x531 PF:  { %s4534_s7 = sld [smem:[#allocation11_spill]] }
 0x537   :  { %p3024_p4 = scmp.le.s32.totalorder %s4534_s7, 4 }
 0x538   :  { %v1688_v14 = vld [vmem:[%s4504_s9] sm:$0xff] (!%p3024_p4)  ;;  %v1689_v15 = vld [vmem:[%s4504_s9 + $0x8] sm:$0xff] (!%p3024_p4)  ;;  %v1690_v17 = vld [vmem:[%s4504_s9 + $0x10] sm:$0xff] (!%p3024_p4)  ;;  %v3840_v18 = vmov (!%p3024_p4), 0.0|0.0   ;;  %vm3841_vm2 = vmmov (!%p3024_p4), 0   ;;  %v3842_v21 = vmov (!%p3024_p4), 0.0   ;;  %v1858_v53 = vlaneseq (!%p3024_p4) }
 0x539   :  { %1674 = sbr.rel (%p3024_p4) target bundleno = 1607 (0x647), region = 101  ;;  %3612 = vmatprep.subr.bf16.mxu0 (!%p3024_p4), %v3840_v18  ;;  %v3613_v19 = vpack.c.bf16 (!%p3024_p4), %v1689_v15, %v1688_v14  ;;  %v1691_v20 = vld [vmem:[%s4504_s9 + $0x18] sm:$0xff] (!%p3024_p4)  ;;  %3398 = vmatprep.mubr.msk.f32.mxu0 (!%p3024_p4), %vm3841_vm2, %v3842_v21  ;;  %v1772_v22 = vld [vmem:[%s4505_s10] sm:$0xff] (!%p3024_p4)  ;;  %vm1940_vm3 = vcmp.gt.s32.totalorder (!%p3024_p4), %v3983_v6, 4  ;;  %v1773_v23 = vld [vmem:[%s4505_s10 + $0x8] sm:$0xff] (!%p3024_p4)  ;;  %v3843_v26 = vmov (!%p3024_p4), 0  }
 0x53a   :  { %3618 = vmatprep.subr.bf16.mxu1 (!%p3024_p4), %v3840_v18  ;;  %v1774_v24 = vld [vmem:[%s4505_s10 + $0x10] sm:$0xff] (!%p3024_p4)  ;;  %v1775_v25 = vld [vmem:[%s4505_s10 + $0x18] sm:$0xff] (!%p3024_p4)  ;;  %3409 = vmatprep.mubr.msk.f32.mxu1 (!%p3024_p4), %vm3841_vm2, %v3842_v21  ;;  %v1941_v27 = vsel (!%p3024_p4), %vm1940_vm3, 1, %v3843_v26  ;;  %v3616_v28 = vpack.c.bf16 (!%p3024_p4), %v1691_v20, %v1690_v17  ;;  %v3619_v29 = vpack.c.bf16 (!%p3024_p4), %v1773_v23, %v1772_v22  ;;  %v1853_v30 = vld [vmem:[%s4506_s11] sm:$0xff] (!%p3024_p4)  ;;  %v1859_v55 = vshrl.u32 (!%p3024_p4), %v1858_v53, 7 }
 0x53b   :  { %3614 = vmatpush3.bf16.msra.mxu0 (!%p3024_p4), %v3613_v19  ;;  %3774 = vset.pattern.permute.xlu0 (!%p3024_p4), %v3843_v26  ;;  %v1854_v31 = vld [vmem:[%s4506_s11 + $0x8] sm:$0xff] (!%p3024_p4)  ;;  %v3622_v32 = vpack.c.bf16 (!%p3024_p4), %v1775_v25, %v1774_v24  ;;  %v1675_v33 = vld [vmem:[#allocation2] sm:$0xff] (!%p3024_p4)  ;;  %v1855_v35 = vld [vmem:[%s4506_s11 + $0x10] sm:$0xff] (!%p3024_p4) }
 0x53c   :  { %3615 = vmatprep.subr.bf16.mxu0 (!%p3024_p4), %v3840_v18  ;;  %1943 = vperm.xlu0 (!%p3024_p4), %3774, %v1941_v27   ;;  %v3625_v34 = vpack.c.bf16 (!%p3024_p4), %v1854_v31, %v1853_v30  ;;  %v1856_v36 = vld [vmem:[%s4506_s11 + $0x18] sm:$0xff] (!%p3024_p4)  ;;  %v1860_v58 = vsub.s32 (!%p3024_p4), 0, %v1859_v55 }
 0x53d   :  { %3620 = vmatpush3.bf16.msra.mxu1 (!%p3024_p4), %v3619_v29  ;;  %v3628_v37 = vpack.c.bf16 (!%p3024_p4), %v1856_v36, %v1855_v35  ;;  %v1677_v38 = vld [vmem:[#allocation3 + $0x4] ss:$8 sm:$0xf] (!%p3024_p4) }
 0x53e   :  { %3621 = vmatprep.subr.bf16.mxu1 (!%p3024_p4), %v3840_v18  ;;  %v1678_v39 = vld [vmem:[#allocation3 + $0x4] ss:$8 sm:$0xf0] (!%p3024_p4)  ;;  %v1861_v60 = vrot.slane (!%p3024_p4), %v4047_v16, %v1860_v58 }
 0x53f   :  { %3617 = vmatpush3.bf16.msra.mxu0 (!%p3024_p4), %v3616_v28  ;;  %v1681_v40 = vld [vmem:[#allocation4 + $0x4] ss:$8 sm:$0xf] (!%p3024_p4)  ;;  %v1679_v42 = vor.u32 (!%p3024_p4), %v1678_v39, %v1677_v38 }
 0x540   :  { %3624 = vmatprep.subr.bf16.mxu0 %v3840_v18  ;;  %v1682_v41 = vld [vmem:[#allocation4 + $0x4] ss:$8 sm:$0xf0] }
 0x541   :  { %3623 = vmatpush3.bf16.msra.mxu1 %v3622_v32  ;;  %v1683_v43 = vor.u32 %v1682_v41, %v1681_v40  ;;  %v1685_v62 = vld [vmem:[#allocation5 + $0x4] ss:$8 sm:$0xf] }
 0x542   :  { %3399 = vmatmul.mubr.msk.f32.vlgmr.msra.gmra.mrb[0].mxu0 %vm157_vm5, %v1675_v33  ;;  %v1686_v63 = vld [vmem:[#allocation5 + $0x4] ss:$8 sm:$0xf0] }
 0x543   :  { %3626 = vmatpush3.bf16.msra.mxu0 %v3625_v34  ;;  %3420 = vmatprep.mubr.msk.f32.mxu0 %vm3841_vm2, %v3842_v21  ;;  %v1687_v1 = vor.u32 %v1686_v63, %v1685_v62 }
 0x544   :  { %3410 = vmatmul.mubr.msk.f32.vlgmr.msra.gmra.mrb[0].mxu1 %vm157_vm5, %v1675_v33  ;;  %3627 = vmatprep.subr.bf16.mxu0 %v3840_v18 }
 0x547   :  { %3629 = vmatpush3.bf16.msra.mxu0 %v3628_v37 }
 0x54a   :  { %3421 = vmatmul.mubr.msk.f32.vlgmr.msra.gmra.mrb[2].mxu0 %vm157_vm5, %v1675_v33 }
 0x5bb   :  { %v1944_v9 = vpop.permute.xlu0 %1943 }
 0x5bc   :  { %vm1945_vm6 = vcmp.eq.s32.totalorder %v1944_v9, 1 }
 0x615   :  { %v1761_v44 = vpop.f32.mrb[0].mxu0 }
 0x616   :  { %v1765_v45 = vadd.f32 %v1761_v44, %v1679_v42  ;;  %v3400_v46 = vpop.f32.mrb[1].mxu0 }
 0x617   :  { %v1842_v47 = vpop.f32.mrb[0].mxu1 }
 0x618   :  { %v3026_v48 = vmul.f32 -1.442695, %v1765_v45  ;;  %v1846_v49 = vadd.f32 %v1842_v47, %v1683_v43  ;;  %v3411_v50 = vpop.f32.mrb[1].mxu1 }
 0x61a   :  { %3775 = vpow2.f32 %v3026_v48  ;;  %v3028_v51 = vmul.f32 -1.442695, %v1846_v49 }
 0x61c   :  { %3777 = vpow2.f32 %v3028_v51 }
 0x61d   :  { %v1929_v52 = vpop.f32.mrb[2].mxu0 }
 0x61e   :  { %v3422_v54 = vpop.f32.mrb[3].mxu0  ;;  %v1930_v0 = vadd.f32 %v1929_v52, %v1861_v60 }
 0x624   :  { %v3776_v56 = vpop.eup %3775 }
 0x625   :  { %v1769_v57 = vadd.f32 1.0, %v3776_v56 }
 0x626   :  { %v3778_v59 = vpop.eup %3777 }
 0x627   :  { %3779 = vrcp.f32 %v1769_v57  ;;  %v1850_v61 = vadd.f32 1.0, %v3778_v59 }
 0x629   :  { %3781 = vrcp.f32 %v1850_v61 }
 0x631   :  { %v3780_v2 = vpop.eup %3779 }
 0x632   :  { %v1933_v3 = vmul.f32 %v3780_v2, %v1930_v0 }
 0x633   :  { %v3782_v7 = vpop.eup %3781 }
 0x634   :  { %v1934_v5 = vadd.f32 %v1933_v3, %v1687_v1  ;;  %v1936_v8 = vsub.f32 1.0, %v3782_v7  ;;  %v1938_v12 = vmul.f32 %v3782_v7, %v1675_v33 }
 0x636   :  { %3783 = vtanh.f32 %v1934_v5 }
 0x640   :  { %v3784_v10 = vpop.eup %3783 }
 0x641   :  { %v1937_v11 = vmul.f32 %v3784_v10, %v1936_v8 }
 0x643   :  { %v1939_v13 = vadd.f32 %v1938_v12, %v1937_v11 }
 0x645   :  { %v1946_v14 = vsel %vm1945_vm6, %v1939_v13, %v1675_v33 }
 0x646   :  { %1947 = vst.msk [vmem:[#allocation2] sm:$0xff] %vm157_vm5, %v1946_v14 }
 0x647 PF:  { %s4535_s19 = sld [smem:[#allocation11_spill]] }
 0x64d   :  { %p3030_p5 = scmp.le.s32.totalorder %s4535_s19, 5 }
 0x64e   :  { %v1965_v15 = vld [vmem:[%s4504_s9] sm:$0xff] (!%p3030_p5)  ;;  %v1966_v17 = vld [vmem:[%s4504_s9 + $0x8] sm:$0xff] (!%p3030_p5)  ;;  %v1967_v18 = vld [vmem:[%s4504_s9 + $0x10] sm:$0xff] (!%p3030_p5)  ;;  %v3844_v19 = vmov (!%p3030_p5), 0.0|0.0   ;;  %vm3845_vm7 = vmmov (!%p3030_p5), 0   ;;  %v3846_v22 = vmov (!%p3030_p5), 0.0   ;;  %v2135_v54 = vlaneseq (!%p3030_p5) }
 0x64f   :  { %1951 = sbr.rel (%p3030_p5) target bundleno = 1885 (0x75d), region = 105  ;;  %3630 = vmatprep.subr.bf16.mxu0 (!%p3030_p5), %v3844_v19  ;;  %v3631_v20 = vpack.c.bf16 (!%p3030_p5), %v1966_v17, %v1965_v15  ;;  %v1968_v21 = vld [vmem:[%s4504_s9 + $0x18] sm:$0xff] (!%p3030_p5)  ;;  %3431 = vmatprep.mubr.msk.f32.mxu0 (!%p3030_p5), %vm3845_vm7, %v3846_v22  ;;  %v2049_v23 = vld [vmem:[%s4505_s10] sm:$0xff] (!%p3030_p5)  ;;  %vm2217_vm8 = vcmp.gt.s32.totalorder (!%p3030_p5), %v3983_v6, 5  ;;  %v2050_v24 = vld [vmem:[%s4505_s10 + $0x8] sm:$0xff] (!%p3030_p5)  ;;  %v3847_v27 = vmov (!%p3030_p5), 0  }
 0x650   :  { %3636 = vmatprep.subr.bf16.mxu1 (!%p3030_p5), %v3844_v19  ;;  %v2051_v25 = vld [vmem:[%s4505_s10 + $0x10] sm:$0xff] (!%p3030_p5)  ;;  %v2052_v26 = vld [vmem:[%s4505_s10 + $0x18] sm:$0xff] (!%p3030_p5)  ;;  %3442 = vmatprep.mubr.msk.f32.mxu1 (!%p3030_p5), %vm3845_vm7, %v3846_v22  ;;  %v2218_v28 = vsel (!%p3030_p5), %vm2217_vm8, 1, %v3847_v27  ;;  %v3634_v29 = vpack.c.bf16 (!%p3030_p5), %v1968_v21, %v1967_v18  ;;  %v3637_v30 = vpack.c.bf16 (!%p3030_p5), %v2050_v24, %v2049_v23  ;;  %v2130_v31 = vld [vmem:[%s4506_s11] sm:$0xff] (!%p3030_p5)  ;;  %v2136_v56 = vshrl.u32 (!%p3030_p5), %v2135_v54, 7 }
 0x651   :  { %3632 = vmatpush3.bf16.msra.mxu0 (!%p3030_p5), %v3631_v20  ;;  %3785 = vset.pattern.permute.xlu0 (!%p3030_p5), %v3847_v27  ;;  %v2131_v32 = vld [vmem:[%s4506_s11 + $0x8] sm:$0xff] (!%p3030_p5)  ;;  %v3640_v33 = vpack.c.bf16 (!%p3030_p5), %v2052_v26, %v2051_v25  ;;  %v1952_v34 = vld [vmem:[#allocation2] sm:$0xff] (!%p3030_p5)  ;;  %v2132_v36 = vld [vmem:[%s4506_s11 + $0x10] sm:$0xff] (!%p3030_p5) }
 0x652   :  { %3633 = vmatprep.subr.bf16.mxu0 (!%p3030_p5), %v3844_v19  ;;  %2220 = vperm.xlu0 (!%p3030_p5), %3785, %v2218_v28   ;;  %v3643_v35 = vpack.c.bf16 (!%p3030_p5), %v2131_v32, %v2130_v31  ;;  %v2133_v37 = vld [vmem:[%s4506_s11 + $0x18] sm:$0xff] (!%p3030_p5)  ;;  %v2137_v59 = vsub.s32 (!%p3030_p5), 0, %v2136_v56 }
 0x653   :  { %3638 = vmatpush3.bf16.msra.mxu1 (!%p3030_p5), %v3637_v30  ;;  %v3646_v38 = vpack.c.bf16 (!%p3030_p5), %v2133_v37, %v2132_v36  ;;  %v1954_v39 = vld [vmem:[#allocation3 + $0x5] ss:$8 sm:$0xf] (!%p3030_p5) }
 0x654   :  { %3639 = vmatprep.subr.bf16.mxu1 (!%p3030_p5), %v3844_v19  ;;  %v1955_v40 = vld [vmem:[#allocation3 + $0x5] ss:$8 sm:$0xf0] (!%p3030_p5)  ;;  %v2138_v61 = vrot.slane (!%p3030_p5), %v4047_v16, %v2137_v59 }
 0x655   :  { %3635 = vmatpush3.bf16.msra.mxu0 (!%p3030_p5), %v3634_v29  ;;  %v1958_v41 = vld [vmem:[#allocation4 + $0x5] ss:$8 sm:$0xf] (!%p3030_p5)  ;;  %v1956_v43 = vor.u32 (!%p3030_p5), %v1955_v40, %v1954_v39 }
 0x656   :  { %3642 = vmatprep.subr.bf16.mxu0 %v3844_v19  ;;  %v1959_v42 = vld [vmem:[#allocation4 + $0x5] ss:$8 sm:$0xf0] }
 0x657   :  { %3641 = vmatpush3.bf16.msra.mxu1 %v3640_v33  ;;  %v1960_v44 = vor.u32 %v1959_v42, %v1958_v41  ;;  %v1962_v63 = vld [vmem:[#allocation5 + $0x5] ss:$8 sm:$0xf] }
 0x658   :  { %3432 = vmatmul.mubr.msk.f32.vlgmr.msra.gmra.mrb[0].mxu0 %vm157_vm5, %v1952_v34  ;;  %v1963_v0 = vld [vmem:[#allocation5 + $0x5] ss:$8 sm:$0xf0] }
 0x659   :  { %3644 = vmatpush3.bf16.msra.mxu0 %v3643_v35  ;;  %3453 = vmatprep.mubr.msk.f32.mxu0 %vm3845_vm7, %v3846_v22  ;;  %v1964_v2 = vor.u32 %v1963_v0, %v1962_v63 }
 0x65a   :  { %3443 = vmatmul.mubr.msk.f32.vlgmr.msra.gmra.mrb[0].mxu1 %vm157_vm5, %v1952_v34  ;;  %3645 = vmatprep.subr.bf16.mxu0 %v3844_v19 }
 0x65d   :  { %3647 = vmatpush3.bf16.msra.mxu0 %v3646_v38 }
 0x660   :  { %3454 = vmatmul.mubr.msk.f32.vlgmr.msra.gmra.mrb[2].mxu0 %vm157_vm5, %v1952_v34 }
 0x6d1   :  { %v2221_v10 = vpop.permute.xlu0 %2220 }
 0x6d2   :  { %vm2222_vm9 = vcmp.eq.s32.totalorder %v2221_v10, 1 }
 0x72b   :  { %v2038_v45 = vpop.f32.mrb[0].mxu0 }
 0x72c   :  { %v2042_v46 = vadd.f32 %v2038_v45, %v1956_v43  ;;  %v3433_v47 = vpop.f32.mrb[1].mxu0 }
 0x72d   :  { %v2119_v48 = vpop.f32.mrb[0].mxu1 }
 0x72e   :  { %v3032_v49 = vmul.f32 -1.442695, %v2042_v46  ;;  %v2123_v50 = vadd.f32 %v2119_v48, %v1960_v44  ;;  %v3444_v51 = vpop.f32.mrb[1].mxu1 }
 0x730   :  { %3786 = vpow2.f32 %v3032_v49  ;;  %v3034_v52 = vmul.f32 -1.442695, %v2123_v50 }
 0x732   :  { %3788 = vpow2.f32 %v3034_v52 }
 0x733   :  { %v2206_v53 = vpop.f32.mrb[2].mxu0 }
 0x734   :  { %v3455_v55 = vpop.f32.mrb[3].mxu0  ;;  %v2207_v1 = vadd.f32 %v2206_v53, %v2138_v61 }
 0x73a   :  { %v3787_v57 = vpop.eup %3786 }
 0x73b   :  { %v2046_v58 = vadd.f32 1.0, %v3787_v57 }
 0x73c   :  { %v3789_v60 = vpop.eup %3788 }
 0x73d   :  { %3790 = vrcp.f32 %v2046_v58  ;;  %v2127_v62 = vadd.f32 1.0, %v3789_v60 }
 0x73f   :  { %3792 = vrcp.f32 %v2127_v62 }
 0x747   :  { %v3791_v3 = vpop.eup %3790 }
 0x748   :  { %v2210_v5 = vmul.f32 %v3791_v3, %v2207_v1 }
 0x749   :  { %v3793_v8 = vpop.eup %3792 }
 0x74a   :  { %v2211_v7 = vadd.f32 %v2210_v5, %v1964_v2  ;;  %v2213_v9 = vsub.f32 1.0, %v3793_v8  ;;  %v2215_v13 = vmul.f32 %v3793_v8, %v1952_v34 }
 0x74c   :  { %3794 = vtanh.f32 %v2211_v7 }
 0x756   :  { %v3795_v11 = vpop.eup %3794 }
 0x757   :  { %v2214_v12 = vmul.f32 %v3795_v11, %v2213_v9 }
 0x759   :  { %v2216_v14 = vadd.f32 %v2215_v13, %v2214_v12 }
 0x75b   :  { %v2223_v15 = vsel %vm2222_vm9, %v2216_v14, %v1952_v34 }
 0x75c   :  { %2224 = vst.msk [vmem:[#allocation2] sm:$0xff] %vm157_vm5, %v2223_v15 }
 0x75d PF:  { %s4536_s5 = sld [smem:[#allocation11_spill]] }
 0x763   :  { %p3036_p6 = scmp.le.s32.totalorder %s4536_s5, 6 }
 0x764   :  { %v2242_v17 = vld [vmem:[%s4504_s9] sm:$0xff] (!%p3036_p6)  ;;  %v2243_v18 = vld [vmem:[%s4504_s9 + $0x8] sm:$0xff] (!%p3036_p6)  ;;  %v2244_v19 = vld [vmem:[%s4504_s9 + $0x10] sm:$0xff] (!%p3036_p6)  ;;  %v3848_v20 = vmov (!%p3036_p6), 0.0|0.0   ;;  %vm3849_vm10 = vmmov (!%p3036_p6), 0   ;;  %v3850_v23 = vmov (!%p3036_p6), 0.0   ;;  %v2412_v55 = vlaneseq (!%p3036_p6) }
 0x765   :  { %2228 = sbr.rel (%p3036_p6) target bundleno = 2163 (0x873), region = 109  ;;  %3648 = vmatprep.subr.bf16.mxu0 (!%p3036_p6), %v3848_v20  ;;  %v3649_v21 = vpack.c.bf16 (!%p3036_p6), %v2243_v18, %v2242_v17  ;;  %v2245_v22 = vld [vmem:[%s4504_s9 + $0x18] sm:$0xff] (!%p3036_p6)  ;;  %3464 = vmatprep.mubr.msk.f32.mxu0 (!%p3036_p6), %vm3849_vm10, %v3850_v23  ;;  %v2326_v24 = vld [vmem:[%s4505_s10] sm:$0xff] (!%p3036_p6)  ;;  %vm2494_vm11 = vcmp.gt.s32.totalorder (!%p3036_p6), %v3983_v6, 6  ;;  %v2327_v25 = vld [vmem:[%s4505_s10 + $0x8] sm:$0xff] (!%p3036_p6)  ;;  %v3851_v28 = vmov (!%p3036_p6), 0  }
 0x766   :  { %3654 = vmatprep.subr.bf16.mxu1 (!%p3036_p6), %v3848_v20  ;;  %v2328_v26 = vld [vmem:[%s4505_s10 + $0x10] sm:$0xff] (!%p3036_p6)  ;;  %v2329_v27 = vld [vmem:[%s4505_s10 + $0x18] sm:$0xff] (!%p3036_p6)  ;;  %3475 = vmatprep.mubr.msk.f32.mxu1 (!%p3036_p6), %vm3849_vm10, %v3850_v23  ;;  %v2495_v29 = vsel (!%p3036_p6), %vm2494_vm11, 1, %v3851_v28  ;;  %v3652_v30 = vpack.c.bf16 (!%p3036_p6), %v2245_v22, %v2244_v19  ;;  %v3655_v31 = vpack.c.bf16 (!%p3036_p6), %v2327_v25, %v2326_v24  ;;  %v2407_v32 = vld [vmem:[%s4506_s11] sm:$0xff] (!%p3036_p6)  ;;  %v2413_v57 = vshrl.u32 (!%p3036_p6), %v2412_v55, 7 }
 0x767   :  { %3650 = vmatpush3.bf16.msra.mxu0 (!%p3036_p6), %v3649_v21  ;;  %3796 = vset.pattern.permute.xlu0 (!%p3036_p6), %v3851_v28  ;;  %v2408_v33 = vld [vmem:[%s4506_s11 + $0x8] sm:$0xff] (!%p3036_p6)  ;;  %v3658_v34 = vpack.c.bf16 (!%p3036_p6), %v2329_v27, %v2328_v26  ;;  %v2229_v35 = vld [vmem:[#allocation2] sm:$0xff] (!%p3036_p6)  ;;  %v2409_v37 = vld [vmem:[%s4506_s11 + $0x10] sm:$0xff] (!%p3036_p6) }
 0x768   :  { %3651 = vmatprep.subr.bf16.mxu0 (!%p3036_p6), %v3848_v20  ;;  %2497 = vperm.xlu0 (!%p3036_p6), %3796, %v2495_v29   ;;  %v3661_v36 = vpack.c.bf16 (!%p3036_p6), %v2408_v33, %v2407_v32  ;;  %v2410_v38 = vld [vmem:[%s4506_s11 + $0x18] sm:$0xff] (!%p3036_p6)  ;;  %v2414_v60 = vsub.s32 (!%p3036_p6), 0, %v2413_v57 }
 0x769   :  { %3656 = vmatpush3.bf16.msra.mxu1 (!%p3036_p6), %v3655_v31  ;;  %v3664_v39 = vpack.c.bf16 (!%p3036_p6), %v2410_v38, %v2409_v37  ;;  %v2231_v40 = vld [vmem:[#allocation3 + $0x6] ss:$8 sm:$0xf] (!%p3036_p6) }
 0x76a   :  { %3657 = vmatprep.subr.bf16.mxu1 (!%p3036_p6), %v3848_v20  ;;  %v2232_v41 = vld [vmem:[#allocation3 + $0x6] ss:$8 sm:$0xf0] (!%p3036_p6)  ;;  %v2415_v62 = vrot.slane (!%p3036_p6), %v4047_v16, %v2414_v60 }
 0x76b   :  { %3653 = vmatpush3.bf16.msra.mxu0 (!%p3036_p6), %v3652_v30  ;;  %v2235_v42 = vld [vmem:[#allocation4 + $0x6] ss:$8 sm:$0xf] (!%p3036_p6)  ;;  %v2233_v44 = vor.u32 (!%p3036_p6), %v2232_v41, %v2231_v40 }
 0x76c   :  { %3660 = vmatprep.subr.bf16.mxu0 %v3848_v20  ;;  %v2236_v43 = vld [vmem:[#allocation4 + $0x6] ss:$8 sm:$0xf0] }
 0x76d   :  { %3659 = vmatpush3.bf16.msra.mxu1 %v3658_v34  ;;  %v2237_v45 = vor.u32 %v2236_v43, %v2235_v42  ;;  %v2239_v0 = vld [vmem:[#allocation5 + $0x6] ss:$8 sm:$0xf] }
 0x76e   :  { %3465 = vmatmul.mubr.msk.f32.vlgmr.msra.gmra.mrb[0].mxu0 %vm157_vm5, %v2229_v35  ;;  %v2240_v1 = vld [vmem:[#allocation5 + $0x6] ss:$8 sm:$0xf0] }
 0x76f   :  { %3662 = vmatpush3.bf16.msra.mxu0 %v3661_v36  ;;  %3486 = vmatprep.mubr.msk.f32.mxu0 %vm3849_vm10, %v3850_v23  ;;  %v2241_v3 = vor.u32 %v2240_v1, %v2239_v0 }
 0x770   :  { %3476 = vmatmul.mubr.msk.f32.vlgmr.msra.gmra.mrb[0].mxu1 %vm157_vm5, %v2229_v35  ;;  %3663 = vmatprep.subr.bf16.mxu0 %v3848_v20 }
 0x773   :  { %3665 = vmatpush3.bf16.msra.mxu0 %v3664_v39 }
 0x776   :  { %3487 = vmatmul.mubr.msk.f32.vlgmr.msra.gmra.mrb[2].mxu0 %vm157_vm5, %v2229_v35 }
 0x7e7   :  { %v2498_v11 = vpop.permute.xlu0 %2497 }
 0x7e8   :  { %vm2499_vm12 = vcmp.eq.s32.totalorder %v2498_v11, 1 }
 0x841   :  { %v2315_v46 = vpop.f32.mrb[0].mxu0 }
 0x842   :  { %v2319_v47 = vadd.f32 %v2315_v46, %v2233_v44  ;;  %v3466_v48 = vpop.f32.mrb[1].mxu0 }
 0x843   :  { %v2396_v49 = vpop.f32.mrb[0].mxu1 }
 0x844   :  { %v3038_v50 = vmul.f32 -1.442695, %v2319_v47  ;;  %v2400_v51 = vadd.f32 %v2396_v49, %v2237_v45  ;;  %v3477_v52 = vpop.f32.mrb[1].mxu1 }
 0x846   :  { %3797 = vpow2.f32 %v3038_v50  ;;  %v3040_v53 = vmul.f32 -1.442695, %v2400_v51 }
 0x848   :  { %3799 = vpow2.f32 %v3040_v53 }
 0x849   :  { %v2483_v54 = vpop.f32.mrb[2].mxu0 }
 0x84a   :  { %v3488_v56 = vpop.f32.mrb[3].mxu0  ;;  %v2484_v2 = vadd.f32 %v2483_v54, %v2415_v62 }
 0x850   :  { %v3798_v58 = vpop.eup %3797 }
 0x851   :  { %v2323_v59 = vadd.f32 1.0, %v3798_v58 }
 0x852   :  { %v3800_v61 = vpop.eup %3799 }
 0x853   :  { %3801 = vrcp.f32 %v2323_v59  ;;  %v2404_v63 = vadd.f32 1.0, %v3800_v61 }
 0x855   :  { %3803 = vrcp.f32 %v2404_v63 }
 0x85d   :  { %v3802_v5 = vpop.eup %3801 }
 0x85e   :  { %v2487_v7 = vmul.f32 %v3802_v5, %v2484_v2 }
 0x85f   :  { %v3804_v9 = vpop.eup %3803 }
 0x860   :  { %v2488_v8 = vadd.f32 %v2487_v7, %v2241_v3  ;;  %v2490_v10 = vsub.f32 1.0, %v3804_v9  ;;  %v2492_v14 = vmul.f32 %v3804_v9, %v2229_v35 }
 0x862   :  { %3805 = vtanh.f32 %v2488_v8 }
 0x86c   :  { %v3806_v12 = vpop.eup %3805 }
 0x86d   :  { %v2491_v13 = vmul.f32 %v3806_v12, %v2490_v10 }
 0x86f   :  { %v2493_v15 = vadd.f32 %v2492_v14, %v2491_v13 }
 0x871   :  { %v2500_v17 = vsel %vm2499_vm12, %v2493_v15, %v2229_v35 }
 0x872   :  { %2501 = vst.msk [vmem:[#allocation2] sm:$0xff] %vm157_vm5, %v2500_v17 }
 0x873 PF:  { %s4537_s0 = sld [smem:[#allocation11_spill]] }
 0x879   :  { %p3042_p7 = scmp.le.s32.totalorder %s4537_s0, 7 }
 0x87a   :  { %v2519_v18 = vld [vmem:[%s4504_s9] sm:$0xff] (!%p3042_p7)  ;;  %v2520_v19 = vld [vmem:[%s4504_s9 + $0x8] sm:$0xff] (!%p3042_p7)  ;;  %v2521_v20 = vld [vmem:[%s4504_s9 + $0x10] sm:$0xff] (!%p3042_p7)  ;;  %v3852_v21 = vmov (!%p3042_p7), 0.0|0.0   ;;  %vm3853_vm13 = vmmov (!%p3042_p7), 0   ;;  %v3854_v24 = vmov (!%p3042_p7), 0.0   ;;  %v2689_v55 = vlaneseq (!%p3042_p7) }
 0x87b   :  { %2505 = sbr.rel (%p3042_p7) target bundleno = 2441 (0x989), region = 113  ;;  %3666 = vmatprep.subr.bf16.mxu0 (!%p3042_p7), %v3852_v21  ;;  %v3667_v22 = vpack.c.bf16 (!%p3042_p7), %v2520_v19, %v2519_v18  ;;  %v2522_v23 = vld [vmem:[%s4504_s9 + $0x18] sm:$0xff] (!%p3042_p7)  ;;  %3497 = vmatprep.mubr.msk.f32.mxu0 (!%p3042_p7), %vm3853_vm13, %v3854_v24  ;;  %v2603_v25 = vld [vmem:[%s4505_s10] sm:$0xff] (!%p3042_p7)  ;;  %vm2771_vm14 = vcmp.gt.s32.totalorder (!%p3042_p7), %v3983_v6, 7  ;;  %v2604_v26 = vld [vmem:[%s4505_s10 + $0x8] sm:$0xff] (!%p3042_p7)  ;;  %v3855_v29 = vmov (!%p3042_p7), 0  }
 0x87c   :  { %3672 = vmatprep.subr.bf16.mxu1 (!%p3042_p7), %v3852_v21  ;;  %v2605_v27 = vld [vmem:[%s4505_s10 + $0x10] sm:$0xff] (!%p3042_p7)  ;;  %v2606_v28 = vld [vmem:[%s4505_s10 + $0x18] sm:$0xff] (!%p3042_p7)  ;;  %3508 = vmatprep.mubr.msk.f32.mxu1 (!%p3042_p7), %vm3853_vm13, %v3854_v24  ;;  %v2772_v30 = vsel (!%p3042_p7), %vm2771_vm14, 1, %v3855_v29  ;;  %v3670_v31 = vpack.c.bf16 (!%p3042_p7), %v2522_v23, %v2521_v20  ;;  %v3673_v6 = vpack.c.bf16 (!%p3042_p7), %v2604_v26, %v2603_v25  ;;  %v2684_v32 = vld [vmem:[%s4506_s11] sm:$0xff] (!%p3042_p7)  ;;  %v2690_v57 = vshrl.u32 (!%p3042_p7), %v2689_v55, 7 }
 0x87d   :  { %3668 = vmatpush3.bf16.msra.mxu0 (!%p3042_p7), %v3667_v22  ;;  %3807 = vset.pattern.permute.xlu0 (!%p3042_p7), %v3855_v29  ;;  %v2685_v33 = vld [vmem:[%s4506_s11 + $0x8] sm:$0xff] (!%p3042_p7)  ;;  %v3676_v34 = vpack.c.bf16 (!%p3042_p7), %v2606_v28, %v2605_v27  ;;  %v2506_v35 = vld [vmem:[#allocation2] sm:$0xff] (!%p3042_p7)  ;;  %v2686_v37 = vld [vmem:[%s4506_s11 + $0x10] sm:$0xff] (!%p3042_p7) }
 0x87e   :  { %3669 = vmatprep.subr.bf16.mxu0 (!%p3042_p7), %v3852_v21  ;;  %2774 = vperm.xlu0 (!%p3042_p7), %3807, %v2772_v30   ;;  %v3679_v36 = vpack.c.bf16 (!%p3042_p7), %v2685_v33, %v2684_v32  ;;  %v2687_v38 = vld [vmem:[%s4506_s11 + $0x18] sm:$0xff] (!%p3042_p7)  ;;  %v2691_v60 = vsub.s32 (!%p3042_p7), 0, %v2690_v57 }
 0x87f   :  { %3674 = vmatpush3.bf16.msra.mxu1 (!%p3042_p7), %v3673_v6  ;;  %v3682_v39 = vpack.c.bf16 (!%p3042_p7), %v2687_v38, %v2686_v37  ;;  %v2508_v40 = vld [vmem:[#allocation3 + $0x7] ss:$8 sm:$0xf] (!%p3042_p7) }
 0x880   :  { %3675 = vmatprep.subr.bf16.mxu1 (!%p3042_p7), %v3852_v21  ;;  %v2509_v41 = vld [vmem:[#allocation3 + $0x7] ss:$8 sm:$0xf0] (!%p3042_p7)  ;;  %v2692_v62 = vrot.slane (!%p3042_p7), %v4047_v16, %v2691_v60 }
 0x881   :  { %3671 = vmatpush3.bf16.msra.mxu0 (!%p3042_p7), %v3670_v31  ;;  %v2512_v42 = vld [vmem:[#allocation4 + $0x7] ss:$8 sm:$0xf] (!%p3042_p7)  ;;  %v2510_v44 = vor.u32 (!%p3042_p7), %v2509_v41, %v2508_v40 }
 0x882   :  { %3678 = vmatprep.subr.bf16.mxu0 %v3852_v21  ;;  %v2513_v43 = vld [vmem:[#allocation4 + $0x7] ss:$8 sm:$0xf0] }
 0x883   :  { %3677 = vmatpush3.bf16.msra.mxu1 %v3676_v34  ;;  %v2514_v45 = vor.u32 %v2513_v43, %v2512_v42  ;;  %v2516_v0 = vld [vmem:[#allocation5 + $0x7] ss:$8 sm:$0xf] }
 0x884   :  { %3498 = vmatmul.mubr.msk.f32.vlgmr.msra.gmra.mrb[0].mxu0 %vm157_vm5, %v2506_v35  ;;  %v2517_v1 = vld [vmem:[#allocation5 + $0x7] ss:$8 sm:$0xf0] }
 0x885   :  { %3680 = vmatpush3.bf16.msra.mxu0 %v3679_v36  ;;  %3519 = vmatprep.mubr.msk.f32.mxu0 %vm3853_vm13, %v3854_v24  ;;  %v2518_v3 = vor.u32 %v2517_v1, %v2516_v0 }
 0x886   :  { %3509 = vmatmul.mubr.msk.f32.vlgmr.msra.gmra.mrb[0].mxu1 %vm157_vm5, %v2506_v35  ;;  %3681 = vmatprep.subr.bf16.mxu0 %v3852_v21 }
 0x889   :  { %3683 = vmatpush3.bf16.msra.mxu0 %v3682_v39 }
 0x88c   :  { %3520 = vmatmul.mubr.msk.f32.vlgmr.msra.gmra.mrb[2].mxu0 %vm157_vm5, %v2506_v35 }
 0x8fd   :  { %v2775_v11 = vpop.permute.xlu0 %2774 }
 0x8fe   :  { %vm2776_vm15 = vcmp.eq.s32.totalorder %v2775_v11, 1 }
 0x957   :  { %v2592_v46 = vpop.f32.mrb[0].mxu0 }
 0x958   :  { %v2596_v47 = vadd.f32 %v2592_v46, %v2510_v44  ;;  %v3499_v48 = vpop.f32.mrb[1].mxu0 }
 0x959   :  { %v2673_v49 = vpop.f32.mrb[0].mxu1 }
 0x95a   :  { %v3044_v50 = vmul.f32 -1.442695, %v2596_v47  ;;  %v2677_v51 = vadd.f32 %v2673_v49, %v2514_v45  ;;  %v3510_v52 = vpop.f32.mrb[1].mxu1 }
 0x95c   :  { %3808 = vpow2.f32 %v3044_v50  ;;  %v3046_v53 = vmul.f32 -1.442695, %v2677_v51 }
 0x95e   :  { %3810 = vpow2.f32 %v3046_v53 }
 0x95f   :  { %v2760_v54 = vpop.f32.mrb[2].mxu0 }
 0x960   :  { %v3521_v56 = vpop.f32.mrb[3].mxu0  ;;  %v2761_v2 = vadd.f32 %v2760_v54, %v2692_v62 }
 0x966   :  { %v3809_v58 = vpop.eup %3808 }
 0x967   :  { %v2600_v59 = vadd.f32 1.0, %v3809_v58 }
 0x968   :  { %v3811_v61 = vpop.eup %3810 }
 0x969   :  { %3812 = vrcp.f32 %v2600_v59  ;;  %v2681_v63 = vadd.f32 1.0, %v3811_v61 }
 0x96b   :  { %3814 = vrcp.f32 %v2681_v63 }
 0x973   :  { %v3813_v5 = vpop.eup %3812 }
 0x974   :  { %v2764_v7 = vmul.f32 %v3813_v5, %v2761_v2 }
 0x975   :  { %v3815_v9 = vpop.eup %3814 }
 0x976   :  { %v2765_v8 = vadd.f32 %v2764_v7, %v2518_v3  ;;  %v2767_v10 = vsub.f32 1.0, %v3815_v9  ;;  %v2769_v14 = vmul.f32 %v3815_v9, %v2506_v35 }
 0x978   :  { %3816 = vtanh.f32 %v2765_v8 }
 0x982   :  { %v3817_v12 = vpop.eup %3816 }
 0x983   :  { %v2768_v13 = vmul.f32 %v3817_v12, %v2767_v10 }
 0x985   :  { %v2770_v15 = vadd.f32 %v2769_v14, %v2768_v13 }
 0x987   :  { %v2777_v17 = vsel %vm2776_vm15, %v2770_v15, %v2506_v35 }
 0x988   :  { %2778 = vst.msk [vmem:[#allocation2] sm:$0xff] %vm157_vm5, %v2777_v17 }
 0x989 PF:  { %v2780_v16 = vld [vmem:[%s4507_s16] sm:$0xff]  ;;  %v2781_v18 = vld [vmem:[%s4507_s16 + $0x8] sm:$0xff]  ;;  %v2782_v19 = vld [vmem:[%s4507_s16 + $0x10] sm:$0xff]  ;;  %3530 = vmatprep.mubr.msk.f32.mxu0 %vm3823_vm4, %v3822_v4  ;;  %3537 = vmatprep.mubr.msk.f32.mxu1 %vm3823_vm4, %v3822_v4  ;;  %v3856_v20 = vmov 0.0|0.0   ;;  %vm2961_vm1 = vcmask 7168  }
 0x98a   :  { %3684 = vmatprep.subr.bf16.mxu0 %v3856_v20  ;;  %v3685_v21 = vpack.c.bf16 %v2781_v18, %v2780_v16  ;;  %v2783_v22 = vld [vmem:[%s4507_s16 + $0x18] sm:$0xff]  ;;  %3690 = vmatprep.subr.bf16.mxu1 %v3856_v20  ;;  %v2871_v25 = vld [vmem:[%s4509_s18] sm:$0xff]  ;;  %v2872_v4 = vld [vmem:[%s4509_s18 + $0x8] sm:$0xff] }
 0x98b   :  { %v3688_v23 = vpack.c.bf16 %v2783_v22, %v2782_v19  ;;  %v3691_v26 = vpack.c.bf16 %v2872_v4, %v2871_v25  ;;  %v3048_v27 = vld [vmem:[%s4508_s17] ss:$0 sm:$0xff]  ;;  %v3051_v36 = vld [vmem:[#allocation7] ss:$0 sm:$0xff] }
 0x98c   :  { %3686 = vmatpush3.bf16.msra.mxu0 %v3685_v21 }
 0x98d   :  { %3687 = vmatprep.subr.bf16.mxu0 %v3856_v20  ;;  %3692 = vmatpush3.bf16.msra.mxu1 %v3691_v26 }
 0x98f   :  { %v2779_v24 = vld [vmem:[#allocation2] sm:$0xff] }
 0x990   :  { %3689 = vmatpush3.bf16.msra.mxu0 %v3688_v23 }
 0x993   :  { %3531 = vmatmul.mubr.msk.f32.vlgmr.msra.gmra.mrb[0].mxu0 %vm157_vm5, %v2779_v24  ;;  %vm2880_vm5 = vcmask 130048  }
 0xa66   :  { %v2860_v28 = vpop.f32.mrb[0].mxu0 }
 0xa67   :  { %v2861_v29 = vadd.f32 %v3048_v27, %v2860_v28  ;;  %v3532_v30 = vpop.f32.mrb[1].mxu0 }
 0xa69   :  { %v2865_v31 = vmul.f32 1.442695, %v2861_v29  ;;  %vm2864_vm4 = vcmp.gt.f32.partialorder %v2861_v29, 0.0 }
 0xa6b   :  { %3818 = vpow2.f32 %v2865_v31 }
 0xa75   :  { %v3819_v6 = vpop.eup %3818 }
 0xa76   :  { %v3050_v32 = vadd.f32 -1.0, %v3819_v6 }
 0xa78   :  { %v2868_v33 = vmul.f32 1.6732632, %v3050_v32 }
 0xa7a   :  { %v2869_v34 = vsel %vm2864_vm4, %v2861_v29, %v2868_v33 }
 0xa7b   :  { %v2870_v35 = vmul.f32 1.050701, %v2869_v34 }
 0xa7d   :  { %3538 = vmatmul.mubr.msk.f32.vlgmr.msra.gmra.mrb[0].mxu1 %vm2880_vm5, %v2870_v35 }
 0xb50   :  { %v2950_v37 = vpop.f32.mrb[0].mxu1 }
 0xb51   :  { %v2951_v38 = vadd.f32 %v3051_v36, %v2950_v37  ;;  %v3539_v39 = vpop.f32.mrb[1].mxu1 }
 0xb53   :  { %v2955_v40 = vmul.f32 1.442695, %v2951_v38  ;;  %vm2954_vm0 = vcmp.gt.f32.partialorder %v2951_v38, 0.0 }
 0xb55   :  { %3820 = vpow2.f32 %v2955_v40 }
 0xb5f   :  { %v3821_v41 = vpop.eup %3820 }
 0xb60   :  { %v3053_v42 = vadd.f32 -1.0, %v3821_v41 }
 0xb62   :  { %v2958_v43 = vmul.f32 1.6732632, %v3053_v42 }
 0xb64   :  { %v2959_v44 = vsel %vm2954_vm0, %v2951_v38, %v2958_v43 }
 0xb65   :  { %v2960_v45 = vmul.f32 1.050701, %v2959_v44 }
 0xb67   :  { %2962 = vst.msk [vmem:[%s4511_s20] sm:$0xff] %vm2961_vm1, %v2960_v45 }

</bundles_post_ra>
